<compile_context>
chip_gen: v7x
topology: tpu7x:2x2x1
jax: 0.10.0
libtpu: 0.0.40
codegen_flags: <defaults>
</compile_context>

<pallas_src>
import math
from functools import partial

import jax
import jax.numpy as jnp
from jax import lax
from jax.experimental import pallas as pl
from jax.experimental.pallas import tpu as pltpu


def _round_up(x, m):
    return (x + m - 1) // m * m


def gru_kernel(gi_ref, whh_ref, bias_ref, bhn_ref, out_ref, h_ref, *, gate_dtype):
    """GRU recurrence over one (S_chunk, B_tile) block.

    gi_ref   : (S_chunk, B_tile, 3*Hp) gi_dtype   precomputed x @ W_ih^T (no biases)
    whh_ref  : (Hp, 3*Hp)              matmul dtype, gate blocks 128-lane aligned
    bias_ref : (1, 3*Hp) f32           b_ih (+ b_hh for the r/z gates)
    bhn_ref  : (1, Hp)   f32           b_hh for the n gate only (stays inside r*(.))
    out_ref  : (S_chunk, B_tile, Hp)   out dtype, per-step hidden states (time-major)
    h_ref    : (B_tile, Hp) f32 VMEM scratch, hidden carry across S chunks
    """
    # Zero-init the carried hidden state at the first S chunk of each batch block.
    @pl.when(pl.program_id(1) == 0)
    def _():
        h_ref[...] = jnp.zeros_like(h_ref)

    s_chunk, b_tile, hp = out_ref.shape
    gdt = gate_dtype

    whh = whh_ref[...]                                        # (Hp, 3Hp), load once
    # Hoisted bias broadcasts (JAX does not CSE broadcast_in_dim inside the loop).
    bias_b = jnp.broadcast_to(bias_ref[...].astype(gdt), (b_tile, 3 * hp))
    bhn_b = jnp.broadcast_to(bhn_ref[...].astype(gdt), (b_tile, hp))

    def step(t, h):                                           # h: (B_tile, Hp) f32
        gh = jnp.dot(h.astype(whh.dtype), whh,
                     preferred_element_type=jnp.float32)      # fp32 MXU accumulate
        gh = gh.astype(gdt)
        gi = gi_ref[t].astype(gdt) + bias_b                   # fp32 biases added here
        # Gate blocks are 128-lane aligned -> whole-vreg slices, no cross-lane work.
        pre_r = gi[:, :hp] + gh[:, :hp]
        pre_z = gi[:, hp:2 * hp] + gh[:, hp:2 * hp]
        # sigmoid(x) == 0.5*tanh(0.5*x) + 0.5 : one EUP push per gate instead of
        # exp + reciprocal; the extra mul/add co-issue on the VPU.
        r = jnp.tanh(pre_r * 0.5) * 0.5 + 0.5
        z = jnp.tanh(pre_z * 0.5) * 0.5 + 0.5
        n = jnp.tanh(gi[:, 2 * hp:] + r * (gh[:, 2 * hp:] + bhn_b))
        # Blend in fp32 so the recurrence carry keeps fp32 precision.
        n32 = n.astype(jnp.float32)
        z32 = z.astype(jnp.float32)
        h_new = n32 + z32 * (h - n32)                         # == (1-z)*n + z*h
        out_ref[t] = h_new.astype(out_ref.dtype)              # unmasked (8,128) store
        return h_new

    # Serial recurrence: unroll only removes loop bookkeeping. Cap it for big
    # bodies so live ranges don't spill out of the 64 vregs.
    big_body = b_tile * hp >= 64 * 128
    if big_body:
        unroll = 2 if s_chunk % 2 == 0 else 1
    elif s_chunk <= 16:
        unroll = True
    elif s_chunk % 8 == 0:
        unroll = 8
    elif s_chunk % 4 == 0:
        unroll = 4
    else:
        unroll = 1

    h_ref[...] = lax.fori_loop(0, s_chunk, step, h_ref[...], unroll=unroll)


def encoder_rnn_forward(input_ids, params, *,
                        matmul_dtype=jnp.bfloat16,
                        gi_dtype=jnp.bfloat16,
                        out_dtype=jnp.bfloat16,
                        gate_dtype=jnp.float32,     # bf16 recommended on v6e/v7x
                        s_chunk=None, b_tile=None,
                        vmem_budget_bytes=40 * 1024 * 1024):
    """Matches EncoderRNN.forward: returns (output (B,S,H), hidden (1,B,H))."""
    emb = params["embedding"].astype(jnp.float32)    # (V, H)
    w_ih = params["w_ih"].astype(jnp.float32)        # (3H, H)
    w_hh = params["w_hh"].astype(jnp.float32)        # (3H, H)
    b_ih = params["b_ih"].astype(jnp.float32)        # (3H,)
    b_hh = params["b_hh"].astype(jnp.float32)        # (3H,)

    B, S = input_ids.shape
    V, H = emb.shape
    Hp = _round_up(H, 128)                           # lane-dense hidden dim

    # ---- Batch tile: sublane-dense, and keep >= 2 batch blocks when possible so
    # the "parallel" grid axis can use the second TensorCore on v7x megacore.
    B8 = _round_up(B, 8)
    if b_tile is None:
        b_tile = min(128, _round_up(-(-B8 // 2), 8)) if B8 >= 16 else B8
    if s_chunk is None:
        s_chunk = max(1, min(S, 64))                 # pipelined S chunks

    # ---- VMEM budgeting: auto-shrink tiles to the budget, then set the scoped
    # limit explicitly (default is 16 MiB on v5e / 32 MiB on v6e-v7x; physical is
    # 128 MiB on v5e/v6e and 64 MiB on v7x).
    def _block_bytes(sc, bt):
        isz = lambda dt: jnp.dtype(dt).itemsize
        gi_b = 2 * sc * bt * 3 * Hp * isz(gi_dtype)          # double-buffered
        out_b = 2 * sc * bt * Hp * isz(out_dtype)
        whh_b = 2 * Hp * 3 * Hp * isz(matmul_dtype)
        small = 2 * 4 * (3 * Hp + Hp)
        h_b = bt * Hp * 4
        return gi_b + out_b + whh_b + small + h_b

    while _block_bytes(s_chunk, b_tile) > vmem_budget_bytes and (s_chunk > 8 or b_tile > 8):
        if s_chunk > 8:
            s_chunk = max(8, s_chunk // 2)
        else:
            b_tile = max(8, b_tile // 2)
    vmem_limit = int(min(max(_block_bytes(s_chunk, b_tile) + (8 << 20), 32 << 20),
                         100 << 20))

    B_pad = _round_up(B, b_tile)
    S_pad = _round_up(S, s_chunk)

    # ---- Fold the input projection into the embedding table (per-gate lane blocks
    # at 128-aligned offsets).  Projection stored in gi_dtype (bf16 by default);
    # biases stay fp32 and are added inside the kernel to keep their precision.
    proj = jnp.zeros((V, 3 * Hp), jnp.float32)
    for g in range(3):                               # gate order r, z, n
        w_g = w_ih[g * H:(g + 1) * H]                # (H, H)
        proj = proj.at[:, g * Hp:g * Hp + H].set(emb @ w_g.T)
    gi_table = proj.astype(gi_dtype)                 # (V, 3Hp)

    bias = jnp.zeros((1, 3 * Hp), jnp.float32)
    for g in range(3):
        b_g = b_ih[g * H:(g + 1) * H]
        if g < 2:                                    # r, z recurrent biases pre-summed
            b_g = b_g + b_hh[g * H:(g + 1) * H]
        bias = bias.at[0, g * Hp:g * Hp + H].set(b_g)
    bhn = jnp.zeros((1, Hp), jnp.float32).at[0, :H].set(b_hh[2 * H:3 * H])

    # ---- Recurrent weight, gate blocks at 128-aligned lane offsets, padded to (Hp, 3Hp).
    whh_pad = jnp.zeros((Hp, 3 * Hp), jnp.float32)
    for g in range(3):
        whh_pad = whh_pad.at[:H, g * Hp:g * Hp + H].set(w_hh[g * H:(g + 1) * H].T)
    whh_pad = whh_pad.astype(matmul_dtype)           # bf16 weights, fp32 accumulate

    # ---- Time-major ids (cheap (B,S) transpose), padded, then one gather of the
    # precomputed gate inputs (bf16 slab -> half the HBM write/read vs fp32).
    # TODO(synk): move this gather in-kernel (PrefetchScalarGridSpec ids + VMEM-resident
    # gi_table or pl.Element row-gather DMA) to drop a full HBM pass at large S*B.
    ids_tm = jnp.zeros((S_pad, B_pad), input_ids.dtype)
    ids_tm = ids_tm.at[:S, :B].set(input_ids.T)
    gi = jnp.take(gi_table, ids_tm, axis=0)          # (S_pad, B_pad, 3Hp) gi_dtype

    grid = (B_pad // b_tile, S_pad // s_chunk)       # (parallel batch, sequential S)

    out_tm = pl.pallas_call(
        partial(gru_kernel, gate_dtype=gate_dtype),
        out_shape=jax.ShapeDtypeStruct((S_pad, B_pad, Hp), out_dtype),
        grid_spec=pltpu.PrefetchScalarGridSpec(
            num_scalar_prefetch=0,
            grid=grid,
            in_specs=[
                pl.BlockSpec((s_chunk, b_tile, 3 * Hp), lambda b, s: (s, b, 0)),
                pl.BlockSpec((Hp, 3 * Hp), lambda b, s: (0, 0)),
                pl.BlockSpec((1, 3 * Hp), lambda b, s: (0, 0)),
                pl.BlockSpec((1, Hp), lambda b, s: (0, 0)),
            ],
            out_specs=pl.BlockSpec((s_chunk, b_tile, Hp), lambda b, s: (s, b, 0)),
            scratch_shapes=[pltpu.VMEM((b_tile, Hp), jnp.float32)],  # hidden carry
        ),
        compiler_params=pltpu.CompilerParams(
            # batch blocks are independent (megacore on v7x); S chunks carry state.
            dimension_semantics=("parallel", "arbitrary"),
            vmem_limit_bytes=vmem_limit,
        ),
    )(gi, whh_pad, bias, bhn)

    # Transpose to batch_first on the (bf16 by default) slab; == output[:, -1] gives hidden.
    output = jnp.transpose(out_tm[:S, :B, :H], (1, 0, 2))   # (B, S, H)
    hidden = out_tm[S - 1, :B, :H][None]                    # (1, B, H)
    return output, hidden


def _reference_forward(input_ids, params):
    """Pure-JAX fp32 reference of PyTorch Embedding + GRU semantics."""
    emb_table = params["embedding"]
    w_ih, w_hh = params["w_ih"], params["w_hh"]
    b_ih, b_hh = params["b_ih"], params["b_hh"]
    H = emb_table.shape[1]

    x = jnp.take(emb_table, input_ids, axis=0)      # (B, S, H)
    B, S, _ = x.shape

    def step(h, x_t):
        gi = x_t @ w_ih.T + b_ih
        gh = h @ w_hh.T + b_hh
        r = jax.nn.sigmoid(gi[:, :H] + gh[:, :H])
        z = jax.nn.sigmoid(gi[:, H:2 * H] + gh[:, H:2 * H])
        n = jnp.tanh(gi[:, 2 * H:] + r * gh[:, 2 * H:])
        h_new = (1.0 - z) * n + z * h
        return h_new, h_new

    h0 = jnp.zeros((B, H), dtype=jnp.float32)
    h_last, outs = lax.scan(step, h0, jnp.transpose(x, (1, 0, 2)))
    return jnp.transpose(outs, (1, 0, 2)), h_last[None]


def init_params(key, input_size, hidden_size):
    k_emb, k_wih, k_whh, k_bih, k_bhh = jax.random.split(key, 5)
    bound = 1.0 / math.sqrt(hidden_size)
    return {
        # nn.Embedding default init: N(0, 1)
        "embedding": jax.random.normal(k_emb, (input_size, hidden_size), jnp.float32),
        # nn.GRU default init: U(-1/sqrt(H), 1/sqrt(H)), gate order [r, z, n]
        "w_ih": jax.random.uniform(k_wih, (3 * hidden_size, hidden_size),
                                   jnp.float32, -bound, bound),
        "w_hh": jax.random.uniform(k_whh, (3 * hidden_size, hidden_size),
                                   jnp.float32, -bound, bound),
        "b_ih": jax.random.uniform(k_bih, (3 * hidden_size,),
                                   jnp.float32, -bound, bound),
        "b_hh": jax.random.uniform(k_bhh, (3 * hidden_size,),
                                   jnp.float32, -bound, bound),
    }


if __name__ == "__main__":
    # TODO(synk): convert2tensors (tokenization of 'How are you doing?') has no
    # Pallas equivalent; synthetic token ids stand in for it.
    INPUT_SIZE = 16   # vocab size
    HIDDEN = 32
    BATCH = 2
    SEQ = 8

    key = jax.random.PRNGKey(0)
    k_params, k_ids, k_params2, k_ids2 = jax.random.split(key, 4)
    params = init_params(k_params, INPUT_SIZE, HIDDEN)
    input_ids = jax.random.randint(k_ids, (BATCH, SEQ), 0, INPUT_SIZE, dtype=jnp.int32)

    ref_out, ref_hid = _reference_forward(input_ids, params)

    # 1) Full fp32 path: tight check against the fp32 reference.
    out32, hid32 = encoder_rnn_forward(
        input_ids, params, matmul_dtype=jnp.float32, gi_dtype=jnp.float32,
        out_dtype=jnp.float32, gate_dtype=jnp.float32)
    out32, hid32 = jax.block_until_ready((out32, hid32))
    assert out32.shape == (BATCH, SEQ, HIDDEN)
    assert hid32.shape == (1, BATCH, HIDDEN)
    assert jnp.allclose(out32, ref_out, atol=1e-4, rtol=1e-4)
    assert jnp.allclose(hid32, ref_hid, atol=1e-4, rtol=1e-4)

    # 2) Default path (bf16 gi/out/W_hh, fp32 gate math + fp32 carry): loose check.
    outbf, hidbf = encoder_rnn_forward(input_ids, params)
    outbf, hidbf = jax.block_until_ready((outbf, hidbf))
    assert jnp.allclose(outbf.astype(jnp.float32), ref_out, atol=5e-2, rtol=5e-2)
    assert jnp.allclose(hidbf.astype(jnp.float32), ref_hid, atol=5e-2, rtol=5e-2)

    # 3) bf16 gate-math path (recommended on v6e/v7x with bf16 VPU/EUP): loose check.
    outg, hidg = encoder_rnn_forward(input_ids, params, gate_dtype=jnp.bfloat16)
    outg, hidg = jax.block_until_ready((outg, hidg))
    assert jnp.allclose(outg.astype(jnp.float32), ref_out, atol=5e-2, rtol=5e-2)
    assert jnp.allclose(hidg.astype(jnp.float32), ref_hid, atol=5e-2, rtol=5e-2)

    # 4) Non-divisible shapes + multi-chunk S grid: exercises padding and the
    #    hidden-state carry across grid steps (fp32 for a tight check).
    V2, B2, S2 = 50, 5, 37
    params2 = init_params(k_params2, V2, HIDDEN)
    ids2 = jax.random.randint(k_ids2, (B2, S2), 0, V2, dtype=jnp.int32)
    out2, hid2 = encoder_rnn_forward(
        ids2, params2, matmul_dtype=jnp.float32, gi_dtype=jnp.float32,
        out_dtype=jnp.float32, gate_dtype=jnp.float32, s_chunk=16)
    out2, hid2 = jax.block_until_ready((out2, hid2))
    ref_out2, ref_hid2 = _reference_forward(ids2, params2)
    assert out2.shape == (B2, S2, HIDDEN)
    assert hid2.shape == (1, B2, HIDDEN)
    assert jnp.allclose(out2, ref_out2, atol=1e-4, rtol=1e-4)
    assert jnp.allclose(hid2, ref_hid2, atol=1e-4, rtol=1e-4)

    print("KERNEL_OK")
</pallas_src>

<mosaic_0001>
module attributes {stable_mosaic.version = 11 : i64} {
  func.func @gru_kernel(%arg0: i32, %arg1: i32, %arg2: memref<8x8x384xf32, #tpu.memory_space<vmem>>, %arg3: memref<128x384xf32, #tpu.memory_space<vmem>>, %arg4: memref<1x384xf32, #tpu.memory_space<vmem>>, %arg5: memref<1x128xf32, #tpu.memory_space<vmem>>, %arg6: memref<8x8x128xf32, #tpu.memory_space<vmem>>, %arg7: memref<8x128xf32, #tpu.memory_space<vmem>>) attributes {dimension_semantics = [#tpu.dimension_semantics<parallel>, #tpu.dimension_semantics<arbitrary>], iteration_bounds = array<i64: 1, 1>, scalar_prefetch = 0 : i64, scratch_operands = 1 : i64, tpu.core_type = #tpu.core_type<tc>, window_params = [{transform_indices = @transform_0, window_bounds = array<i64: 8, 8, 384>}, {pipeline_mode = #tpu.pipeline_mode<synchronous>, transform_indices = @transform_1, window_bounds = array<i64: 128, 384>}, {pipeline_mode = #tpu.pipeline_mode<synchronous>, transform_indices = @transform_2, window_bounds = array<i64: 1, 384>}, {pipeline_mode = #tpu.pipeline_mode<synchronous>, transform_indices = @transform_3, window_bounds = array<i64: 1, 128>}, {transform_indices = @transform_4, window_bounds = array<i64: 8, 8, 128>}]} {
    %c0_i32 = arith.constant 0 : i32
    %0 = arith.cmpi eq, %arg1, %c0_i32 : i32
    %1 = arith.extui %0 : i1 to i32
    %c0_i32_0 = arith.constant 0 : i32
    %2 = arith.cmpi ne, %1, %c0_i32_0 : i32
    scf.if %2 {
      %cst_98 = arith.constant 0.000000e+00 : f32
      %316 = vector.broadcast %cst_98 : f32 to vector<8x128xf32>
      %c0_99 = arith.constant 0 : index
      %c0_100 = arith.constant 0 : index
      %317 = vector.load %arg7[%c0_99, %c0_100] : memref<8x128xf32, #tpu.memory_space<vmem>>, vector<8x128xf32>
      tpu.vector_store %arg7[%c0_99, %c0_100], %316 {strides = array<i32>} : memref<8x128xf32, #tpu.memory_space<vmem>>, vector<8x128xf32>,
    } else {
    }
    %c0 = arith.constant 0 : index
    %c0_1 = arith.constant 0 : index
    %3 = vector.load %arg3[%c0, %c0_1] : memref<128x384xf32, #tpu.memory_space<vmem>>, vector<128x384xf32>
    %c0_2 = arith.constant 0 : index
    %c0_3 = arith.constant 0 : index
    %4 = vector.load %arg4[%c0_2, %c0_3] : memref<1x384xf32, #tpu.memory_space<vmem>>, vector<1x384xf32>
    %5 = vector.shape_cast %4 : vector<1x384xf32> to vector<1x384xf32>
    %6 = vector.broadcast %5 : vector<1x384xf32> to vector<8x384xf32>
    %c0_4 = arith.constant 0 : index
    %c0_5 = arith.constant 0 : index
    %7 = vector.load %arg5[%c0_4, %c0_5] : memref<1x128xf32, #tpu.memory_space<vmem>>, vector<1x128xf32>
    %8 = vector.shape_cast %7 : vector<1x128xf32> to vector<1x128xf32>
    %9 = vector.broadcast %8 : vector<1x128xf32> to vector<8x128xf32>
    %c0_6 = arith.constant 0 : index
    %c0_7 = arith.constant 0 : index
    %10 = vector.load %arg7[%c0_6, %c0_7] : memref<8x128xf32, #tpu.memory_space<vmem>>, vector<8x128xf32>
    %c0_i32_8 = arith.constant 0 : i32
    %cst = arith.constant dense<0.000000e+00> : vector<8x384xf32>
    %11 = tpu.matmul %10, %3, %cst {dimension_numbers = #tpu.dot_dimension_numbers<[1], [0], [0], [1], [0, 0, 1, 1], [], []>} : vector<8x128xf32>, vector<128x384xf32>, vector<8x384xf32> -> vector<8x384xf32>
    %12 = arith.index_cast %c0_i32_8 : i32 to index
    %c0_9 = arith.constant 0 : index
    %c0_10 = arith.constant 0 : index
    %13 = vector.load %arg2[%12, %c0_9, %c0_10] : memref<8x8x384xf32, #tpu.memory_space<vmem>>, vector<1x8x384xf32>
    %14 = vector.shape_cast %13 : vector<1x8x384xf32> to vector<8x384xf32>
    %15 = arith.addf %14, %6 : vector<8x384xf32>
    %16 = vector.extract_strided_slice %15 {offsets = [0, 0], sizes = [8, 128], strides = [1, 1]} : vector<8x384xf32> to vector<8x128xf32>
    %17 = vector.extract_strided_slice %11 {offsets = [0, 0], sizes = [8, 128], strides = [1, 1]} : vector<8x384xf32> to vector<8x128xf32>
    %18 = arith.addf %16, %17 : vector<8x128xf32>
    %19 = vector.extract_strided_slice %15 {offsets = [0, 128], sizes = [8, 128], strides = [1, 1]} : vector<8x384xf32> to vector<8x128xf32>
    %20 = vector.extract_strided_slice %11 {offsets = [0, 128], sizes = [8, 128], strides = [1, 1]} : vector<8x384xf32> to vector<8x128xf32>
    %21 = arith.addf %19, %20 : vector<8x128xf32>
    %cst_11 = arith.constant 5.000000e-01 : f32
    %22 = vector.broadcast %cst_11 : f32 to vector<8x128xf32>
    %23 = arith.mulf %18, %22 : vector<8x128xf32>
    %24 = math.tanh %23 : vector<8x128xf32>
    %cst_12 = arith.constant 5.000000e-01 : f32
    %25 = vector.broadcast %cst_12 : f32 to vector<8x128xf32>
    %26 = arith.mulf %24, %25 : vector<8x128xf32>
    %cst_13 = arith.constant 5.000000e-01 : f32
    %27 = vector.broadcast %cst_13 : f32 to vector<8x128xf32>
    %28 = arith.addf %26, %27 : vector<8x128xf32>
    %cst_14 = arith.constant 5.000000e-01 : f32
    %29 = vector.broadcast %cst_14 : f32 to vector<8x128xf32>
    %30 = arith.mulf %21, %29 : vector<8x128xf32>
    %31 = math.tanh %30 : vector<8x128xf32>
    %cst_15 = arith.constant 5.000000e-01 : f32
    %32 = vector.broadcast %cst_15 : f32 to vector<8x128xf32>
    %33 = arith.mulf %31, %32 : vector<8x128xf32>
    %cst_16 = arith.constant 5.000000e-01 : f32
    %34 = vector.broadcast %cst_16 : f32 to vector<8x128xf32>
    %35 = arith.addf %33, %34 : vector<8x128xf32>
    %36 = vector.extract_strided_slice %15 {offsets = [0, 256], sizes = [8, 128], strides = [1, 1]} : vector<8x384xf32> to vector<8x128xf32>
    %37 = vector.extract_strided_slice %11 {offsets = [0, 256], sizes = [8, 128], strides = [1, 1]} : vector<8x384xf32> to vector<8x128xf32>
    %38 = arith.addf %37, %9 : vector<8x128xf32>
    %39 = arith.mulf %28, %38 : vector<8x128xf32>
    %40 = arith.addf %36, %39 : vector<8x128xf32>
    %41 = math.tanh %40 : vector<8x128xf32>
    %42 = arith.subf %10, %41 : vector<8x128xf32>
    %43 = arith.mulf %35, %42 : vector<8x128xf32>
    %44 = arith.addf %41, %43 : vector<8x128xf32>
    %45 = arith.index_cast %c0_i32_8 : i32 to index
    %c0_17 = arith.constant 0 : index
    %c0_18 = arith.constant 0 : index
    %46 = vector.load %arg6[%45, %c0_17, %c0_18] : memref<8x8x128xf32, #tpu.memory_space<vmem>>, vector<1x8x128xf32>
    %47 = vector.shape_cast %46 : vector<1x8x128xf32> to vector<8x128xf32>
    %48 = vector.shape_cast %44 : vector<8x128xf32> to vector<1x8x128xf32>
    tpu.vector_store %arg6[%45, %c0_17, %c0_18], %48 {strides = array<i32>} : memref<8x8x128xf32, #tpu.memory_space<vmem>>, vector<1x8x128xf32>,
    %c1_i32 = arith.constant 1 : i32
    %cst_19 = arith.constant dense<0.000000e+00> : vector<8x384xf32>
    %49 = tpu.matmul %44, %3, %cst_19 {dimension_numbers = #tpu.dot_dimension_numbers<[1], [0], [0], [1], [0, 0, 1, 1], [], []>} : vector<8x128xf32>, vector<128x384xf32>, vector<8x384xf32> -> vector<8x384xf32>
    %50 = arith.index_cast %c1_i32 : i32 to index
    %c0_20 = arith.constant 0 : index
    %c0_21 = arith.constant 0 : index
    %51 = vector.load %arg2[%50, %c0_20, %c0_21] : memref<8x8x384xf32, #tpu.memory_space<vmem>>, vector<1x8x384xf32>
    %52 = vector.shape_cast %51 : vector<1x8x384xf32> to vector<8x384xf32>
    %53 = arith.addf %52, %6 : vector<8x384xf32>
    %54 = vector.extract_strided_slice %53 {offsets = [0, 0], sizes = [8, 128], strides = [1, 1]} : vector<8x384xf32> to vector<8x128xf32>
    %55 = vector.extract_strided_slice %49 {offsets = [0, 0], sizes = [8, 128], strides = [1, 1]} : vector<8x384xf32> to vector<8x128xf32>
    %56 = arith.addf %54, %55 : vector<8x128xf32>
    %57 = vector.extract_strided_slice %53 {offsets = [0, 128], sizes = [8, 128], strides = [1, 1]} : vector<8x384xf32> to vector<8x128xf32>
    %58 = vector.extract_strided_slice %49 {offsets = [0, 128], sizes = [8, 128], strides = [1, 1]} : vector<8x384xf32> to vector<8x128xf32>
    %59 = arith.addf %57, %58 : vector<8x128xf32>
    %cst_22 = arith.constant 5.000000e-01 : f32
    %60 = vector.broadcast %cst_22 : f32 to vector<8x128xf32>
    %61 = arith.mulf %56, %60 : vector<8x128xf32>
    %62 = math.tanh %61 : vector<8x128xf32>
    %cst_23 = arith.constant 5.000000e-01 : f32
    %63 = vector.broadcast %cst_23 : f32 to vector<8x128xf32>
    %64 = arith.mulf %62, %63 : vector<8x128xf32>
    %cst_24 = arith.constant 5.000000e-01 : f32
    %65 = vector.broadcast %cst_24 : f32 to vector<8x128xf32>
    %66 = arith.addf %64, %65 : vector<8x128xf32>
    %cst_25 = arith.constant 5.000000e-01 : f32
    %67 = vector.broadcast %cst_25 : f32 to vector<8x128xf32>
    %68 = arith.mulf %59, %67 : vector<8x128xf32>
    %69 = math.tanh %68 : vector<8x128xf32>
    %cst_26 = arith.constant 5.000000e-01 : f32
    %70 = vector.broadcast %cst_26 : f32 to vector<8x128xf32>
    %71 = arith.mulf %69, %70 : vector<8x128xf32>
    %cst_27 = arith.constant 5.000000e-01 : f32
    %72 = vector.broadcast %cst_27 : f32 to vector<8x128xf32>
    %73 = arith.addf %71, %72 : vector<8x128xf32>
    %74 = vector.extract_strided_slice %53 {offsets = [0, 256], sizes = [8, 128], strides = [1, 1]} : vector<8x384xf32> to vector<8x128xf32>
    %75 = vector.extract_strided_slice %49 {offsets = [0, 256], sizes = [8, 128], strides = [1, 1]} : vector<8x384xf32> to vector<8x128xf32>
    %76 = arith.addf %75, %9 : vector<8x128xf32>
    %77 = arith.mulf %66, %76 : vector<8x128xf32>
    %78 = arith.addf %74, %77 : vector<8x128xf32>
    %79 = math.tanh %78 : vector<8x128xf32>
    %80 = arith.subf %44, %79 : vector<8x128xf32>
    %81 = arith.mulf %73, %80 : vector<8x128xf32>
    %82 = arith.addf %79, %81 : vector<8x128xf32>
    %83 = arith.index_cast %c1_i32 : i32 to index
    %c0_28 = arith.constant 0 : index
    %c0_29 = arith.constant 0 : index
    %84 = vector.load %arg6[%83, %c0_28, %c0_29] : memref<8x8x128xf32, #tpu.memory_space<vmem>>, vector<1x8x128xf32>
    %85 = vector.shape_cast %84 : vector<1x8x128xf32> to vector<8x128xf32>
    %86 = vector.shape_cast %82 : vector<8x128xf32> to vector<1x8x128xf32>
    tpu.vector_store %arg6[%83, %c0_28, %c0_29], %86 {strides = array<i32>} : memref<8x8x128xf32, #tpu.memory_space<vmem>>, vector<1x8x128xf32>,
    %c2_i32 = arith.constant 2 : i32
    %cst_30 = arith.constant dense<0.000000e+00> : vector<8x384xf32>
    %87 = tpu.matmul %82, %3, %cst_30 {dimension_numbers = #tpu.dot_dimension_numbers<[1], [0], [0], [1], [0, 0, 1, 1], [], []>} : vector<8x128xf32>, vector<128x384xf32>, vector<8x384xf32> -> vector<8x384xf32>
    %88 = arith.index_cast %c2_i32 : i32 to index
    %c0_31 = arith.constant 0 : index
    %c0_32 = arith.constant 0 : index
    %89 = vector.load %arg2[%88, %c0_31, %c0_32] : memref<8x8x384xf32, #tpu.memory_space<vmem>>, vector<1x8x384xf32>
    %90 = vector.shape_cast %89 : vector<1x8x384xf32> to vector<8x384xf32>
    %91 = arith.addf %90, %6 : vector<8x384xf32>
    %92 = vector.extract_strided_slice %91 {offsets = [0, 0], sizes = [8, 128], strides = [1, 1]} : vector<8x384xf32> to vector<8x128xf32>
    %93 = vector.extract_strided_slice %87 {offsets = [0, 0], sizes = [8, 128], strides = [1, 1]} : vector<8x384xf32> to vector<8x128xf32>
    %94 = arith.addf %92, %93 : vector<8x128xf32>
    %95 = vector.extract_strided_slice %91 {offsets = [0, 128], sizes = [8, 128], strides = [1, 1]} : vector<8x384xf32> to vector<8x128xf32>
    %96 = vector.extract_strided_slice %87 {offsets = [0, 128], sizes = [8, 128], strides = [1, 1]} : vector<8x384xf32> to vector<8x128xf32>
    %97 = arith.addf %95, %96 : vector<8x128xf32>
    %cst_33 = arith.constant 5.000000e-01 : f32
    %98 = vector.broadcast %cst_33 : f32 to vector<8x128xf32>
    %99 = arith.mulf %94, %98 : vector<8x128xf32>
    %100 = math.tanh %99 : vector<8x128xf32>
    %cst_34 = arith.constant 5.000000e-01 : f32
    %101 = vector.broadcast %cst_34 : f32 to vector<8x128xf32>
    %102 = arith.mulf %100, %101 : vector<8x128xf32>
    %cst_35 = arith.constant 5.000000e-01 : f32
    %103 = vector.broadcast %cst_35 : f32 to vector<8x128xf32>
    %104 = arith.addf %102, %103 : vector<8x128xf32>
    %cst_36 = arith.constant 5.000000e-01 : f32
    %105 = vector.broadcast %cst_36 : f32 to vector<8x128xf32>
    %106 = arith.mulf %97, %105 : vector<8x128xf32>
    %107 = math.tanh %106 : vector<8x128xf32>
    %cst_37 = arith.constant 5.000000e-01 : f32
    %108 = vector.broadcast %cst_37 : f32 to vector<8x128xf32>
    %109 = arith.mulf %107, %108 : vector<8x128xf32>
    %cst_38 = arith.constant 5.000000e-01 : f32
    %110 = vector.broadcast %cst_38 : f32 to vector<8x128xf32>
    %111 = arith.addf %109, %110 : vector<8x128xf32>
    %112 = vector.extract_strided_slice %91 {offsets = [0, 256], sizes = [8, 128], strides = [1, 1]} : vector<8x384xf32> to vector<8x128xf32>
    %113 = vector.extract_strided_slice %87 {offsets = [0, 256], sizes = [8, 128], strides = [1, 1]} : vector<8x384xf32> to vector<8x128xf32>
    %114 = arith.addf %113, %9 : vector<8x128xf32>
    %115 = arith.mulf %104, %114 : vector<8x128xf32>
    %116 = arith.addf %112, %115 : vector<8x128xf32>
    %117 = math.tanh %116 : vector<8x128xf32>
    %118 = arith.subf %82, %117 : vector<8x128xf32>
    %119 = arith.mulf %111, %118 : vector<8x128xf32>
    %120 = arith.addf %117, %119 : vector<8x128xf32>
    %121 = arith.index_cast %c2_i32 : i32 to index
    %c0_39 = arith.constant 0 : index
    %c0_40 = arith.constant 0 : index
    %122 = vector.load %arg6[%121, %c0_39, %c0_40] : memref<8x8x128xf32, #tpu.memory_space<vmem>>, vector<1x8x128xf32>
    %123 = vector.shape_cast %122 : vector<1x8x128xf32> to vector<8x128xf32>
    %124 = vector.shape_cast %120 : vector<8x128xf32> to vector<1x8x128xf32>
    tpu.vector_store %arg6[%121, %c0_39, %c0_40], %124 {strides = array<i32>} : memref<8x8x128xf32, #tpu.memory_space<vmem>>, vector<1x8x128xf32>,
    %c3_i32 = arith.constant 3 : i32
    %cst_41 = arith.constant dense<0.000000e+00> : vector<8x384xf32>
    %125 = tpu.matmul %120, %3, %cst_41 {dimension_numbers = #tpu.dot_dimension_numbers<[1], [0], [0], [1], [0, 0, 1, 1], [], []>} : vector<8x128xf32>, vector<128x384xf32>, vector<8x384xf32> -> vector<8x384xf32>
    %126 = arith.index_cast %c3_i32 : i32 to index
    %c0_42 = arith.constant 0 : index
    %c0_43 = arith.constant 0 : index
    %127 = vector.load %arg2[%126, %c0_42, %c0_43] : memref<8x8x384xf32, #tpu.memory_space<vmem>>, vector<1x8x384xf32>
    %128 = vector.shape_cast %127 : vector<1x8x384xf32> to vector<8x384xf32>
    %129 = arith.addf %128, %6 : vector<8x384xf32>
    %130 = vector.extract_strided_slice %129 {offsets = [0, 0], sizes = [8, 128], strides = [1, 1]} : vector<8x384xf32> to vector<8x128xf32>
    %131 = vector.extract_strided_slice %125 {offsets = [0, 0], sizes = [8, 128], strides = [1, 1]} : vector<8x384xf32> to vector<8x128xf32>
    %132 = arith.addf %130, %131 : vector<8x128xf32>
    %133 = vector.extract_strided_slice %129 {offsets = [0, 128], sizes = [8, 128], strides = [1, 1]} : vector<8x384xf32> to vector<8x128xf32>
    %134 = vector.extract_strided_slice %125 {offsets = [0, 128], sizes = [8, 128], strides = [1, 1]} : vector<8x384xf32> to vector<8x128xf32>
    %135 = arith.addf %133, %134 : vector<8x128xf32>
    %cst_44 = arith.constant 5.000000e-01 : f32
    %136 = vector.broadcast %cst_44 : f32 to vector<8x128xf32>
    %137 = arith.mulf %132, %136 : vector<8x128xf32>
    %138 = math.tanh %137 : vector<8x128xf32>
    %cst_45 = arith.constant 5.000000e-01 : f32
    %139 = vector.broadcast %cst_45 : f32 to vector<8x128xf32>
    %140 = arith.mulf %138, %139 : vector<8x128xf32>
    %cst_46 = arith.constant 5.000000e-01 : f32
    %141 = vector.broadcast %cst_46 : f32 to vector<8x128xf32>
    %142 = arith.addf %140, %141 : vector<8x128xf32>
    %cst_47 = arith.constant 5.000000e-01 : f32
    %143 = vector.broadcast %cst_47 : f32 to vector<8x128xf32>
    %144 = arith.mulf %135, %143 : vector<8x128xf32>
    %145 = math.tanh %144 : vector<8x128xf32>
    %cst_48 = arith.constant 5.000000e-01 : f32
    %146 = vector.broadcast %cst_48 : f32 to vector<8x128xf32>
    %147 = arith.mulf %145, %146 : vector<8x128xf32>
    %cst_49 = arith.constant 5.000000e-01 : f32
    %148 = vector.broadcast %cst_49 : f32 to vector<8x128xf32>
    %149 = arith.addf %147, %148 : vector<8x128xf32>
    %150 = vector.extract_strided_slice %129 {offsets = [0, 256], sizes = [8, 128], strides = [1, 1]} : vector<8x384xf32> to vector<8x128xf32>
    %151 = vector.extract_strided_slice %125 {offsets = [0, 256], sizes = [8, 128], strides = [1, 1]} : vector<8x384xf32> to vector<8x128xf32>
    %152 = arith.addf %151, %9 : vector<8x128xf32>
    %153 = arith.mulf %142, %152 : vector<8x128xf32>
    %154 = arith.addf %150, %153 : vector<8x128xf32>
    %155 = math.tanh %154 : vector<8x128xf32>
    %156 = arith.subf %120, %155 : vector<8x128xf32>
    %157 = arith.mulf %149, %156 : vector<8x128xf32>
    %158 = arith.addf %155, %157 : vector<8x128xf32>
    %159 = arith.index_cast %c3_i32 : i32 to index
    %c0_50 = arith.constant 0 : index
    %c0_51 = arith.constant 0 : index
    %160 = vector.load %arg6[%159, %c0_50, %c0_51] : memref<8x8x128xf32, #tpu.memory_space<vmem>>, vector<1x8x128xf32>
    %161 = vector.shape_cast %160 : vector<1x8x128xf32> to vector<8x128xf32>
    %162 = vector.shape_cast %158 : vector<8x128xf32> to vector<1x8x128xf32>
    tpu.vector_store %arg6[%159, %c0_50, %c0_51], %162 {strides = array<i32>} : memref<8x8x128xf32, #tpu.memory_space<vmem>>, vector<1x8x128xf32>,
    %c4_i32 = arith.constant 4 : i32
    %cst_52 = arith.constant dense<0.000000e+00> : vector<8x384xf32>
    %163 = tpu.matmul %158, %3, %cst_52 {dimension_numbers = #tpu.dot_dimension_numbers<[1], [0], [0], [1], [0, 0, 1, 1], [], []>} : vector<8x128xf32>, vector<128x384xf32>, vector<8x384xf32> -> vector<8x384xf32>
    %164 = arith.index_cast %c4_i32 : i32 to index
    %c0_53 = arith.constant 0 : index
    %c0_54 = arith.constant 0 : index
    %165 = vector.load %arg2[%164, %c0_53, %c0_54] : memref<8x8x384xf32, #tpu.memory_space<vmem>>, vector<1x8x384xf32>
    %166 = vector.shape_cast %165 : vector<1x8x384xf32> to vector<8x384xf32>
    %167 = arith.addf %166, %6 : vector<8x384xf32>
    %168 = vector.extract_strided_slice %167 {offsets = [0, 0], sizes = [8, 128], strides = [1, 1]} : vector<8x384xf32> to vector<8x128xf32>
    %169 = vector.extract_strided_slice %163 {offsets = [0, 0], sizes = [8, 128], strides = [1, 1]} : vector<8x384xf32> to vector<8x128xf32>
    %170 = arith.addf %168, %169 : vector<8x128xf32>
    %171 = vector.extract_strided_slice %167 {offsets = [0, 128], sizes = [8, 128], strides = [1, 1]} : vector<8x384xf32> to vector<8x128xf32>
    %172 = vector.extract_strided_slice %163 {offsets = [0, 128], sizes = [8, 128], strides = [1, 1]} : vector<8x384xf32> to vector<8x128xf32>
    %173 = arith.addf %171, %172 : vector<8x128xf32>
    %cst_55 = arith.constant 5.000000e-01 : f32
    %174 = vector.broadcast %cst_55 : f32 to vector<8x128xf32>
    %175 = arith.mulf %170, %174 : vector<8x128xf32>
    %176 = math.tanh %175 : vector<8x128xf32>
    %cst_56 = arith.constant 5.000000e-01 : f32
    %177 = vector.broadcast %cst_56 : f32 to vector<8x128xf32>
    %178 = arith.mulf %176, %177 : vector<8x128xf32>
    %cst_57 = arith.constant 5.000000e-01 : f32
    %179 = vector.broadcast %cst_57 : f32 to vector<8x128xf32>
    %180 = arith.addf %178, %179 : vector<8x128xf32>
    %cst_58 = arith.constant 5.000000e-01 : f32
    %181 = vector.broadcast %cst_58 : f32 to vector<8x128xf32>
    %182 = arith.mulf %173, %181 : vector<8x128xf32>
    %183 = math.tanh %182 : vector<8x128xf32>
    %cst_59 = arith.constant 5.000000e-01 : f32
    %184 = vector.broadcast %cst_59 : f32 to vector<8x128xf32>
    %185 = arith.mulf %183, %184 : vector<8x128xf32>
    %cst_60 = arith.constant 5.000000e-01 : f32
    %186 = vector.broadcast %cst_60 : f32 to vector<8x128xf32>
    %187 = arith.addf %185, %186 : vector<8x128xf32>
    %188 = vector.extract_strided_slice %167 {offsets = [0, 256], sizes = [8, 128], strides = [1, 1]} : vector<8x384xf32> to vector<8x128xf32>
    %189 = vector.extract_strided_slice %163 {offsets = [0, 256], sizes = [8, 128], strides = [1, 1]} : vector<8x384xf32> to vector<8x128xf32>
    %190 = arith.addf %189, %9 : vector<8x128xf32>
    %191 = arith.mulf %180, %190 : vector<8x128xf32>
    %192 = arith.addf %188, %191 : vector<8x128xf32>
    %193 = math.tanh %192 : vector<8x128xf32>
    %194 = arith.subf %158, %193 : vector<8x128xf32>
    %195 = arith.mulf %187, %194 : vector<8x128xf32>
    %196 = arith.addf %193, %195 : vector<8x128xf32>
    %197 = arith.index_cast %c4_i32 : i32 to index
    %c0_61 = arith.constant 0 : index
    %c0_62 = arith.constant 0 : index
    %198 = vector.load %arg6[%197, %c0_61, %c0_62] : memref<8x8x128xf32, #tpu.memory_space<vmem>>, vector<1x8x128xf32>
    %199 = vector.shape_cast %198 : vector<1x8x128xf32> to vector<8x128xf32>
    %200 = vector.shape_cast %196 : vector<8x128xf32> to vector<1x8x128xf32>
    tpu.vector_store %arg6[%197, %c0_61, %c0_62], %200 {strides = array<i32>} : memref<8x8x128xf32, #tpu.memory_space<vmem>>, vector<1x8x128xf32>,
    %c5_i32 = arith.constant 5 : i32
    %cst_63 = arith.constant dense<0.000000e+00> : vector<8x384xf32>
    %201 = tpu.matmul %196, %3, %cst_63 {dimension_numbers = #tpu.dot_dimension_numbers<[1], [0], [0], [1], [0, 0, 1, 1], [], []>} : vector<8x128xf32>, vector<128x384xf32>, vector<8x384xf32> -> vector<8x384xf32>
    %202 = arith.index_cast %c5_i32 : i32 to index
    %c0_64 = arith.constant 0 : index
    %c0_65 = arith.constant 0 : index
    %203 = vector.load %arg2[%202, %c0_64, %c0_65] : memref<8x8x384xf32, #tpu.memory_space<vmem>>, vector<1x8x384xf32>
    %204 = vector.shape_cast %203 : vector<1x8x384xf32> to vector<8x384xf32>
    %205 = arith.addf %204, %6 : vector<8x384xf32>
    %206 = vector.extract_strided_slice %205 {offsets = [0, 0], sizes = [8, 128], strides = [1, 1]} : vector<8x384xf32> to vector<8x128xf32>
    %207 = vector.extract_strided_slice %201 {offsets = [0, 0], sizes = [8, 128], strides = [1, 1]} : vector<8x384xf32> to vector<8x128xf32>
    %208 = arith.addf %206, %207 : vector<8x128xf32>
    %209 = vector.extract_strided_slice %205 {offsets = [0, 128], sizes = [8, 128], strides = [1, 1]} : vector<8x384xf32> to vector<8x128xf32>
    %210 = vector.extract_strided_slice %201 {offsets = [0, 128], sizes = [8, 128], strides = [1, 1]} : vector<8x384xf32> to vector<8x128xf32>
    %211 = arith.addf %209, %210 : vector<8x128xf32>
    %cst_66 = arith.constant 5.000000e-01 : f32
    %212 = vector.broadcast %cst_66 : f32 to vector<8x128xf32>
    %213 = arith.mulf %208, %212 : vector<8x128xf32>
    %214 = math.tanh %213 : vector<8x128xf32>
    %cst_67 = arith.constant 5.000000e-01 : f32
    %215 = vector.broadcast %cst_67 : f32 to vector<8x128xf32>
    %216 = arith.mulf %214, %215 : vector<8x128xf32>
    %cst_68 = arith.constant 5.000000e-01 : f32
    %217 = vector.broadcast %cst_68 : f32 to vector<8x128xf32>
    %218 = arith.addf %216, %217 : vector<8x128xf32>
    %cst_69 = arith.constant 5.000000e-01 : f32
    %219 = vector.broadcast %cst_69 : f32 to vector<8x128xf32>
    %220 = arith.mulf %211, %219 : vector<8x128xf32>
    %221 = math.tanh %220 : vector<8x128xf32>
    %cst_70 = arith.constant 5.000000e-01 : f32
    %222 = vector.broadcast %cst_70 : f32 to vector<8x128xf32>
    %223 = arith.mulf %221, %222 : vector<8x128xf32>
    %cst_71 = arith.constant 5.000000e-01 : f32
    %224 = vector.broadcast %cst_71 : f32 to vector<8x128xf32>
    %225 = arith.addf %223, %224 : vector<8x128xf32>
    %226 = vector.extract_strided_slice %205 {offsets = [0, 256], sizes = [8, 128], strides = [1, 1]} : vector<8x384xf32> to vector<8x128xf32>
    %227 = vector.extract_strided_slice %201 {offsets = [0, 256], sizes = [8, 128], strides = [1, 1]} : vector<8x384xf32> to vector<8x128xf32>
    %228 = arith.addf %227, %9 : vector<8x128xf32>
    %229 = arith.mulf %218, %228 : vector<8x128xf32>
    %230 = arith.addf %226, %229 : vector<8x128xf32>
    %231 = math.tanh %230 : vector<8x128xf32>
    %232 = arith.subf %196, %231 : vector<8x128xf32>
    %233 = arith.mulf %225, %232 : vector<8x128xf32>
    %234 = arith.addf %231, %233 : vector<8x128xf32>
    %235 = arith.index_cast %c5_i32 : i32 to index
    %c0_72 = arith.constant 0 : index
    %c0_73 = arith.constant 0 : index
    %236 = vector.load %arg6[%235, %c0_72, %c0_73] : memref<8x8x128xf32, #tpu.memory_space<vmem>>, vector<1x8x128xf32>
    %237 = vector.shape_cast %236 : vector<1x8x128xf32> to vector<8x128xf32>
    %238 = vector.shape_cast %234 : vector<8x128xf32> to vector<1x8x128xf32>
    tpu.vector_store %arg6[%235, %c0_72, %c0_73], %238 {strides = array<i32>} : memref<8x8x128xf32, #tpu.memory_space<vmem>>, vector<1x8x128xf32>,
    %c6_i32 = arith.constant 6 : i32
    %cst_74 = arith.constant dense<0.000000e+00> : vector<8x384xf32>
    %239 = tpu.matmul %234, %3, %cst_74 {dimension_numbers = #tpu.dot_dimension_numbers<[1], [0], [0], [1], [0, 0, 1, 1], [], []>} : vector<8x128xf32>, vector<128x384xf32>, vector<8x384xf32> -> vector<8x384xf32>
    %240 = arith.index_cast %c6_i32 : i32 to index
    %c0_75 = arith.constant 0 : index
    %c0_76 = arith.constant 0 : index
    %241 = vector.load %arg2[%240, %c0_75, %c0_76] : memref<8x8x384xf32, #tpu.memory_space<vmem>>, vector<1x8x384xf32>
    %242 = vector.shape_cast %241 : vector<1x8x384xf32> to vector<8x384xf32>
    %243 = arith.addf %242, %6 : vector<8x384xf32>
    %244 = vector.extract_strided_slice %243 {offsets = [0, 0], sizes = [8, 128], strides = [1, 1]} : vector<8x384xf32> to vector<8x128xf32>
    %245 = vector.extract_strided_slice %239 {offsets = [0, 0], sizes = [8, 128], strides = [1, 1]} : vector<8x384xf32> to vector<8x128xf32>
    %246 = arith.addf %244, %245 : vector<8x128xf32>
    %247 = vector.extract_strided_slice %243 {offsets = [0, 128], sizes = [8, 128], strides = [1, 1]} : vector<8x384xf32> to vector<8x128xf32>
    %248 = vector.extract_strided_slice %239 {offsets = [0, 128], sizes = [8, 128], strides = [1, 1]} : vector<8x384xf32> to vector<8x128xf32>
    %249 = arith.addf %247, %248 : vector<8x128xf32>
    %cst_77 = arith.constant 5.000000e-01 : f32
    %250 = vector.broadcast %cst_77 : f32 to vector<8x128xf32>
    %251 = arith.mulf %246, %250 : vector<8x128xf32>
    %252 = math.tanh %251 : vector<8x128xf32>
    %cst_78 = arith.constant 5.000000e-01 : f32
    %253 = vector.broadcast %cst_78 : f32 to vector<8x128xf32>
    %254 = arith.mulf %252, %253 : vector<8x128xf32>
    %cst_79 = arith.constant 5.000000e-01 : f32
    %255 = vector.broadcast %cst_79 : f32 to vector<8x128xf32>
    %256 = arith.addf %254, %255 : vector<8x128xf32>
    %cst_80 = arith.constant 5.000000e-01 : f32
    %257 = vector.broadcast %cst_80 : f32 to vector<8x128xf32>
    %258 = arith.mulf %249, %257 : vector<8x128xf32>
    %259 = math.tanh %258 : vector<8x128xf32>
    %cst_81 = arith.constant 5.000000e-01 : f32
    %260 = vector.broadcast %cst_81 : f32 to vector<8x128xf32>
    %261 = arith.mulf %259, %260 : vector<8x128xf32>
    %cst_82 = arith.constant 5.000000e-01 : f32
    %262 = vector.broadcast %cst_82 : f32 to vector<8x128xf32>
    %263 = arith.addf %261, %262 : vector<8x128xf32>
    %264 = vector.extract_strided_slice %243 {offsets = [0, 256], sizes = [8, 128], strides = [1, 1]} : vector<8x384xf32> to vector<8x128xf32>
    %265 = vector.extract_strided_slice %239 {offsets = [0, 256], sizes = [8, 128], strides = [1, 1]} : vector<8x384xf32> to vector<8x128xf32>
    %266 = arith.addf %265, %9 : vector<8x128xf32>
    %267 = arith.mulf %256, %266 : vector<8x128xf32>
    %268 = arith.addf %264, %267 : vector<8x128xf32>
    %269 = math.tanh %268 : vector<8x128xf32>
    %270 = arith.subf %234, %269 : vector<8x128xf32>
    %271 = arith.mulf %263, %270 : vector<8x128xf32>
    %272 = arith.addf %269, %271 : vector<8x128xf32>
    %273 = arith.index_cast %c6_i32 : i32 to index
    %c0_83 = arith.constant 0 : index
    %c0_84 = arith.constant 0 : index
    %274 = vector.load %arg6[%273, %c0_83, %c0_84] : memref<8x8x128xf32, #tpu.memory_space<vmem>>, vector<1x8x128xf32>
    %275 = vector.shape_cast %274 : vector<1x8x128xf32> to vector<8x128xf32>
    %276 = vector.shape_cast %272 : vector<8x128xf32> to vector<1x8x128xf32>
    tpu.vector_store %arg6[%273, %c0_83, %c0_84], %276 {strides = array<i32>} : memref<8x8x128xf32, #tpu.memory_space<vmem>>, vector<1x8x128xf32>,
    %c7_i32 = arith.constant 7 : i32
    %cst_85 = arith.constant dense<0.000000e+00> : vector<8x384xf32>
    %277 = tpu.matmul %272, %3, %cst_85 {dimension_numbers = #tpu.dot_dimension_numbers<[1], [0], [0], [1], [0, 0, 1, 1], [], []>} : vector<8x128xf32>, vector<128x384xf32>, vector<8x384xf32> -> vector<8x384xf32>
    %278 = arith.index_cast %c7_i32 : i32 to index
    %c0_86 = arith.constant 0 : index
    %c0_87 = arith.constant 0 : index
    %279 = vector.load %arg2[%278, %c0_86, %c0_87] : memref<8x8x384xf32, #tpu.memory_space<vmem>>, vector<1x8x384xf32>
    %280 = vector.shape_cast %279 : vector<1x8x384xf32> to vector<8x384xf32>
    %281 = arith.addf %280, %6 : vector<8x384xf32>
    %282 = vector.extract_strided_slice %281 {offsets = [0, 0], sizes = [8, 128], strides = [1, 1]} : vector<8x384xf32> to vector<8x128xf32>
    %283 = vector.extract_strided_slice %277 {offsets = [0, 0], sizes = [8, 128], strides = [1, 1]} : vector<8x384xf32> to vector<8x128xf32>
    %284 = arith.addf %282, %283 : vector<8x128xf32>
    %285 = vector.extract_strided_slice %281 {offsets = [0, 128], sizes = [8, 128], strides = [1, 1]} : vector<8x384xf32> to vector<8x128xf32>
    %286 = vector.extract_strided_slice %277 {offsets = [0, 128], sizes = [8, 128], strides = [1, 1]} : vector<8x384xf32> to vector<8x128xf32>
    %287 = arith.addf %285, %286 : vector<8x128xf32>
    %cst_88 = arith.constant 5.000000e-01 : f32
    %288 = vector.broadcast %cst_88 : f32 to vector<8x128xf32>
    %289 = arith.mulf %284, %288 : vector<8x128xf32>
    %290 = math.tanh %289 : vector<8x128xf32>
    %cst_89 = arith.constant 5.000000e-01 : f32
    %291 = vector.broadcast %cst_89 : f32 to vector<8x128xf32>
    %292 = arith.mulf %290, %291 : vector<8x128xf32>
    %cst_90 = arith.constant 5.000000e-01 : f32
    %293 = vector.broadcast %cst_90 : f32 to vector<8x128xf32>
    %294 = arith.addf %292, %293 : vector<8x128xf32>
    %cst_91 = arith.constant 5.000000e-01 : f32
    %295 = vector.broadcast %cst_91 : f32 to vector<8x128xf32>
    %296 = arith.mulf %287, %295 : vector<8x128xf32>
    %297 = math.tanh %296 : vector<8x128xf32>
    %cst_92 = arith.constant 5.000000e-01 : f32
    %298 = vector.broadcast %cst_92 : f32 to vector<8x128xf32>
    %299 = arith.mulf %297, %298 : vector<8x128xf32>
    %cst_93 = arith.constant 5.000000e-01 : f32
    %300 = vector.broadcast %cst_93 : f32 to vector<8x128xf32>
    %301 = arith.addf %299, %300 : vector<8x128xf32>
    %302 = vector.extract_strided_slice %281 {offsets = [0, 256], sizes = [8, 128], strides = [1, 1]} : vector<8x384xf32> to vector<8x128xf32>
    %303 = vector.extract_strided_slice %277 {offsets = [0, 256], sizes = [8, 128], strides = [1, 1]} : vector<8x384xf32> to vector<8x128xf32>
    %304 = arith.addf %303, %9 : vector<8x128xf32>
    %305 = arith.mulf %294, %304 : vector<8x128xf32>
    %306 = arith.addf %302, %305 : vector<8x128xf32>
    %307 = math.tanh %306 : vector<8x128xf32>
    %308 = arith.subf %272, %307 : vector<8x128xf32>
    %309 = arith.mulf %301, %308 : vector<8x128xf32>
    %310 = arith.addf %307, %309 : vector<8x128xf32>
    %311 = arith.index_cast %c7_i32 : i32 to index
    %c0_94 = arith.constant 0 : index
    %c0_95 = arith.constant 0 : index
    %312 = vector.load %arg6[%311, %c0_94, %c0_95] : memref<8x8x128xf32, #tpu.memory_space<vmem>>, vector<1x8x128xf32>
    %313 = vector.shape_cast %312 : vector<1x8x128xf32> to vector<8x128xf32>
    %314 = vector.shape_cast %310 : vector<8x128xf32> to vector<1x8x128xf32>
    tpu.vector_store %arg6[%311, %c0_94, %c0_95], %314 {strides = array<i32>} : memref<8x8x128xf32, #tpu.memory_space<vmem>>, vector<1x8x128xf32>,
    %c8_i32 = arith.constant 8 : i32
    %c0_96 = arith.constant 0 : index
    %c0_97 = arith.constant 0 : index
    %315 = vector.load %arg7[%c0_96, %c0_97] : memref<8x128xf32, #tpu.memory_space<vmem>>, vector<8x128xf32>
    tpu.vector_store %arg7[%c0_96, %c0_97], %310 {strides = array<i32>} : memref<8x128xf32, #tpu.memory_space<vmem>>, vector<8x128xf32>,
    return
  }
  func.func @transform_0(%arg0: i32, %arg1: i32) -> (i32, i32, i32) {
    %c0_i32 = arith.constant 0 : i32
    %c0_i32_0 = arith.constant 0 : i32
    return %arg1, %arg0, %c0_i32 : i32, i32, i32
  }
  func.func @transform_1(%arg0: i32, %arg1: i32) -> (i32, i32) {
    %c0_i32 = arith.constant 0 : i32
    %c0_i32_0 = arith.constant 0 : i32
    %c0_i32_1 = arith.constant 0 : i32
    return %c0_i32, %c0_i32_0 : i32, i32
  }
  func.func @transform_2(%arg0: i32, %arg1: i32) -> (i32, i32) {
    %c0_i32 = arith.constant 0 : i32
    %c0_i32_0 = arith.constant 0 : i32
    %c0_i32_1 = arith.constant 0 : i32
    return %c0_i32, %c0_i32_0 : i32, i32
  }
  func.func @transform_3(%arg0: i32, %arg1: i32) -> (i32, i32) {
    %c0_i32 = arith.constant 0 : i32
    %c0_i32_0 = arith.constant 0 : i32
    %c0_i32_1 = arith.constant 0 : i32
    return %c0_i32, %c0_i32_0 : i32, i32
  }
  func.func @transform_4(%arg0: i32, %arg1: i32) -> (i32, i32, i32) {
    %c0_i32 = arith.constant 0 : i32
    %c0_i32_0 = arith.constant 0 : i32
    return %arg1, %arg0, %c0_i32 : i32, i32, i32
  }
}

</mosaic_0001>

<bundles_post_ra>
// kernel: tpu_custom_call.1
= control target key start
LH: loop header
LB: loop body
LE: loop exit
PB: predicated region body
PF: predicated region fallthrough
CT: control target
= control target key end

     0   :  { %9 = vsyncpa [#allocation4], 0  ;;  %s2955_s0 = inlined_call_operand.hbm [shape: f32[8,8,384], index: 0, kind: input, shape index: {}]   ;;  %s2956_s1 = inlined_call_operand.hbm [shape: f32[128,384], index: 1, kind: input, shape index: {}]   ;;  %s2957_s2 = inlined_call_operand.vmem [shape: f32[1,384], index: 2, kind: input, shape index: {}]   ;;  %s2958_s3 = inlined_call_operand.vmem [shape: f32[1,128], index: 3, kind: input, shape index: {}]   ;;  %s2959_s4 = inlined_call_operand.hbm [shape: f32[8,8,128], index: 4, kind: output, shape index: {}]  }
   0x1   :  { %10 = vsyncpa [#allocation7], 0 }
   0x2   :  { %11 = vsyncpa [#allocation5], 0  ;;  %s2472_s15 = smov [#allocation3]   ;;  %s2400_s19 = scalar_lea.hbm %s2955_s0, 3072 }
   0x3   :  { %s17_s16 = sshll.u32 %s2472_s15, 4  ;;  %p2401_p0 = scmp.ne.s32.totalorder %s2955_s0, %s2400_s19  ;;  %s18_s16 = int_to_ptr.vmem [resolvable:$true] %s17_s16 }
   0x4   :  { %p2404_p1 = scmp.lt.u32.totalorder %s2400_s19, %s2955_s0 }
   0x6   :  { %p2406_p2 = pnand %p2404_p1, %p2401_p0 }
   0x8   :  { %2409 = shalt.err (!%p2406_p2)
}
   0x9   :  { %s2410_s24 = scalar_lea.vmem %s18_s16, 3072  ;;  %p2415_p4 = scmp.lt.s32.totalorder %s18_s16, %s18_s16 }
   0xa   :  { %p2411_p3 = scmp.ne.s32.totalorder %s18_s16, %s2410_s24  ;;  %p2416_p5 = scmp.lt.s32.totalorder %s2410_s24, %s2410_s24 }
   0xc   :  { %p2417_p6 = por %p2416_p5, %p2415_p4 }
   0xe   :  { %p2418_p7 = pnand %p2417_p6, %p2411_p3 }
  0x10   :  { %2421 = shalt.err (!%p2418_p7)
}
  0x11   :  { %s2473_s25 = smov 384   ;;  %s2474_s26 = smov 24  }
  0x12   :  { %23 = dma.hbm_to_vmem [thread:$0]  %s2955_s0, 3072, %s18_s16, [#allocation4], %s2473_s25, %s2473_s25, %s2474_s26  }
  0x13   :  { %s2475_s29 = smov [#allocation6]   ;;  %s2422_s7 = scalar_lea.hbm %s2956_s1, 6144 }
  0x14   :  { %s29_s30 = sshll.u32 %s2475_s29, 4  ;;  %p2423_p8 = scmp.ne.s32.totalorder %s2956_s1, %s2422_s7  ;;  %s30_s30 = int_to_ptr.vmem [resolvable:$true] %s29_s30 }
  0x15   :  { %p2426_p9 = scmp.lt.u32.totalorder %s2422_s7, %s2956_s1 }
  0x17   :  { %p2428_p10 = pnand %p2426_p9, %p2423_p8 }
  0x19   :  { %2431 = shalt.err (!%p2428_p10)
}
  0x1a   :  { %s2432_s12 = scalar_lea.vmem %s30_s30, 6144  ;;  %p2437_p12 = scmp.lt.s32.totalorder %s30_s30, %s30_s30 }
  0x1b   :  { %p2433_p11 = scmp.ne.s32.totalorder %s30_s30, %s2432_s12  ;;  %p2438_p13 = scmp.lt.s32.totalorder %s2432_s12, %s2432_s12 }
  0x1d   :  { %p2439_p0 = por %p2438_p13, %p2437_p12 }
  0x1f   :  { %p2440_p1 = pnand %p2439_p0, %p2433_p11 }
  0x21   :  { %2443 = shalt.err (!%p2440_p1)
}
  0x22   :  { %35 = dma.hbm_to_vmem [thread:$0]  %s2956_s1, 6144, %s30_s30, [#allocation7], %s2473_s25, %s2473_s25, %s2474_s26  }
  0x23   :  { %2466 = dma.done.wait [#allocation4], 3072  }
  0x24   :  { %2467 = vsyncadd [#allocation4], 4294964224 }
  0x25   :  { %2468 = dma.done.wait [#allocation7], 6144  }
  0x26   :  { %2469 = vsyncadd [#allocation7], 4294961152  ;;  %v2476_v0 = vmov 0.0|0.0   ;;  %v2477_v1 = vmov 0.0   ;;  %vm2478_vm0 = vmmov 0   ;;  %v52_v2 = vld [vmem:[#allocation6 + $0x8] sm:$0xff] }
  0x27   :  { %1926 = vmatprep.subr.bf16.mxu1 %v2476_v0  ;;  %188 = vmatprep.mubr.f32.mxu0 %v2477_v1  ;;  %v55_v3 = vld [vmem:[#allocation6 + $0x20] sm:$0xff]  ;;  %v54_v6 = vld [vmem:[#allocation6 + $0x18] sm:$0xff]  ;;  %v61_v8 = vld [vmem:[#allocation6 + $0x50] sm:$0xff] }
  0x28   :  { %1646 = vmatprep.mubr.msk.f32.mxu1 %vm2478_vm0, %v2477_v1  ;;  %v51_v4 = vld [vmem:[#allocation6] sm:$0xff]  ;;  %v2535_v5 = vpack.c.bf16 %v55_v3, %v52_v2  ;;  %v58_v7 = vld [vmem:[#allocation6 + $0x38] sm:$0xff]  ;;  %v57_v11 = vld [vmem:[#allocation6 + $0x30] sm:$0xff] }
  0x29   :  { %v2537_v9 = vpack.c.bf16 %v54_v6, %v51_v4  ;;  %v2539_v10 = vpack.c.bf16 %v61_v8, %v58_v7  ;;  %v60_v12 = vld [vmem:[#allocation6 + $0x48] sm:$0xff]  ;;  %v67_v14 = vld [vmem:[#allocation6 + $0x80] sm:$0xff]  ;;  %v66_v18 = vld [vmem:[#allocation6 + $0x78] sm:$0xff] }
  0x2a   :  { %v64_v13 = vld [vmem:[#allocation6 + $0x68] sm:$0xff]  ;;  %1895 = vmatprep.subr.bf16.mxu0 %v2535_v5  ;;  %v2543_v15 = vpack.c.bf16 %v60_v12, %v57_v11  ;;  %v63_v17 = vld [vmem:[#allocation6 + $0x60] sm:$0xff]  ;;  %v70_v19 = vld [vmem:[#allocation6 + $0x98] sm:$0xff] }
  0x2b   :  { %1897 = vmatpush1.bf16.msra.mxu0 %v2537_v9  ;;  %v2546_v16 = vpack.c.bf16 %v67_v14, %v64_v13  ;;  %v73_v20 = vld [vmem:[#allocation6 + $0xb0] sm:$0xff]  ;;  %v56_v22 = vld [vmem:[#allocation6 + $0x28] sm:$0xff]  ;;  %v2549_v23 = vpack.c.bf16 %v66_v18, %v63_v17  ;;  %v59_v25 = vld [vmem:[#allocation6 + $0x40] sm:$0xff]  ;;  %v101_v17 = vlaneseq }
  0x2c   :  { %1899 = vmatprep.subr.bf16.mxu0 %v2539_v10  ;;  %v53_v21 = vld [vmem:[#allocation6 + $0x10] sm:$0xff]  ;;  %v2554_v26 = vpack.c.bf16 %v73_v20, %v70_v19  ;;  %v72_v28 = vld [vmem:[#allocation6 + $0xa8] sm:$0xff]  ;;  %v62_v29 = vld [vmem:[#allocation6 + $0x58] sm:$0xff] }
  0x2d   :  { %v2551_v24 = vpack.c.bf16 %v56_v22, %v53_v21  ;;  %v69_v27 = vld [vmem:[#allocation6 + $0x90] sm:$0xff]  ;;  %v76_v30 = vld [vmem:[#allocation6 + $0xc8] sm:$0xff]  ;;  %v79_v31 = vld [vmem:[#allocation6 + $0xe0] sm:$0xff]  ;;  %v2557_v32 = vpack.c.bf16 %v62_v29, %v59_v25  ;;  %v102_v18 = vshrl.u32 %v101_v17, 7 }
  0x2e   :  { %v65_v33 = vld [vmem:[#allocation6 + $0x70] sm:$0xff]  ;;  %v68_v34 = vld [vmem:[#allocation6 + $0x88] sm:$0xff]  ;;  %v2561_v35 = vpack.c.bf16 %v72_v28, %v69_v27  ;;  %v2564_v36 = vpack.c.bf16 %v79_v31, %v76_v30  ;;  %v75_v37 = vld [vmem:[#allocation6 + $0xc0] sm:$0xff] }
  0x2f   :  { %1901 = vmatpush1.bf16.msra.mxu0 %v2543_v15  ;;  %1928 = vmatpush3.bf16.msra.mxu1 %v2551_v24  ;;  %v78_v38 = vld [vmem:[#allocation6 + $0xd8] sm:$0xff]  ;;  %v85_v40 = vld [vmem:[#allocation6 + $0x110] sm:$0xff]  ;;  %v2567_v41 = vpack.c.bf16 %v68_v34, %v65_v33  ;;  %v71_v42 = vld [vmem:[#allocation6 + $0xa0] sm:$0xff]  ;;  %v103_v19 = vsub.s32 0, %v102_v18  ;;  %v107_v27 = vsub.s32 1, %v102_v18 }
  0x30   :  { %1903 = vmatprep.subr.bf16.mxu0 %v2546_v16  ;;  %1929 = vmatprep.subr.bf16.mxu1 %v2476_v0  ;;  %v82_v39 = vld [vmem:[#allocation6 + $0xf8] sm:$0xff]  ;;  %v2571_v44 = vpack.c.bf16 %v78_v38, %v75_v37  ;;  %v81_v46 = vld [vmem:[#allocation6 + $0xf0] sm:$0xff]  ;;  %v84_v47 = vld [vmem:[#allocation6 + $0x108] sm:$0xff] }
  0x31   :  { %v74_v43 = vld [vmem:[#allocation6 + $0xb8] sm:$0xff]  ;;  %v2574_v45 = vpack.c.bf16 %v85_v40, %v82_v39  ;;  %v88_v48 = vld [vmem:[#allocation6 + $0x128] sm:$0xff]  ;;  %v91_v49 = vld [vmem:[#allocation6 + $0x140] sm:$0xff]  ;;  %v2581_v53 = vpack.c.bf16 %v84_v47, %v81_v46 }
  0x32   :  { %v2577_v50 = vpack.c.bf16 %v74_v43, %v71_v42  ;;  %v77_v51 = vld [vmem:[#allocation6 + $0xd0] sm:$0xff]  ;;  %v80_v52 = vld [vmem:[#allocation6 + $0xe8] sm:$0xff]  ;;  %v2584_v54 = vpack.c.bf16 %v91_v49, %v88_v48  ;;  %v87_v55 = vld [vmem:[#allocation6 + $0x120] sm:$0xff]  ;;  %v111_v42 = vsub.s32 2, %v102_v18 }
  0x33   :  { %1905 = vmatpush1.bf16.msra.mxu0 %v2549_v23  ;;  %1931 = vmatpush3.bf16.msra.mxu1 %v2557_v32  ;;  %v90_v56 = vld [vmem:[#allocation6 + $0x138] sm:$0xff]  ;;  %v97_v58 = vld [vmem:[#allocation6 + $0x170] sm:$0xff]  ;;  %v2587_v59 = vpack.c.bf16 %v80_v52, %v77_v51  ;;  %v83_v60 = vld [vmem:[#allocation6 + $0x100] sm:$0xff] }
  0x34   :  { %1907 = vmatprep.subr.bf16.mxu0 %v2554_v26  ;;  %1932 = vmatprep.subr.bf16.mxu1 %v2476_v0  ;;  %v94_v57 = vld [vmem:[#allocation6 + $0x158] sm:$0xff]  ;;  %v2591_v62 = vpack.c.bf16 %v90_v56, %v87_v55  ;;  %v93_v2 = vld [vmem:[#allocation6 + $0x150] sm:$0xff]  ;;  %v96_v3 = vld [vmem:[#allocation6 + $0x168] sm:$0xff] }
  0x35   :  { %v86_v61 = vld [vmem:[#allocation6 + $0x118] sm:$0xff]  ;;  %v2594_v63 = vpack.c.bf16 %v97_v58, %v94_v57  ;;  %v89_v6 = vld [vmem:[#allocation6 + $0x130] sm:$0xff]  ;;  %v92_v7 = vld [vmem:[#allocation6 + $0x148] sm:$0xff]  ;;  %v2601_v8 = vpack.c.bf16 %v96_v3, %v93_v2 }
  0x36   :  { %v2597_v4 = vpack.c.bf16 %v86_v61, %v83_v60  ;;  %v2605_v11 = vpack.c.bf16 %v92_v7, %v89_v6  ;;  %v95_v12 = vld [vmem:[#allocation6 + $0x160] sm:$0xff]  ;;  %v98_v13 = vld [vmem:[#allocation6 + $0x178] sm:$0xff]  ;;  %v266_v34 = vld [vmem:[#allocation3 + $0x8] sm:$0xff] }
  0x37   :  { %1909 = vmatpush1.bf16.msra.mxu0 %v2561_v35  ;;  %1934 = vmatpush3.bf16.msra.mxu1 %v2567_v41  ;;  %v2611_v14 = vpack.c.bf16 %v98_v13, %v95_v12  ;;  %v99_v20 = vld [vmem:[%s2957_s2] sm:$0x7]  ;;  %v267_v49 = vld [vmem:[#allocation3 + $0x10] sm:$0xff]  ;;  %v431_v13 = vld [vmem:[#allocation3 + $0x18] sm:$0xff] }
  0x38   :  { %1911 = vmatprep.subr.bf16.mxu0 %v2564_v36  ;;  %1935 = vmatprep.subr.bf16.mxu1 %v2476_v0  ;;  %v2656_v21 = vrot.slane %v99_v20, %v103_v19  ;;  %v265_v22 = vld [vmem:[#allocation3] sm:$0xff]  ;;  %v2659_v31 = vrot.slane %v99_v20, %v107_v27  ;;  %v2667_v47 = vrot.slane %v99_v20, %v111_v42 }
  0x39   :  { %v2665_v43 = vld [vmem:[%s2958_s3] ss:$0 sm:$0xff]  ;;  %s2479_s3 = smov [#allocation8]  }
  0x3a   :  { %v268_v25 = vadd.f32 %v265_v22, %v2656_v21  ;;  %v269_v37 = vadd.f32 %v266_v34, %v2659_v31  ;;  %v270_v55 = vadd.f32 %v267_v49, %v2667_v47  ;;  %v434_v17 = vadd.f32 %v431_v13, %v2656_v21  ;;  %s1464_s16 = sshll.u32 %s2479_s3, 4  ;;  %s1465_s16 = int_to_ptr.vmem [resolvable:$true] %s1464_s16 }
  0x3b   :  { %1913 = vmatpush1.bf16.msra.mxu0 %v2571_v44  ;;  %1937 = vmatpush3.bf16.msra.mxu1 %v2577_v50  ;;  %s2444_s17 = scalar_lea.vmem %s1465_s16, 1024  ;;  %p2449_p3 = scmp.lt.s32.totalorder %s1465_s16, %s1465_s16 }
  0x3c   :  { %1915 = vmatprep.subr.bf16.mxu0 %v2574_v45  ;;  %1938 = vmatprep.subr.bf16.mxu1 %v2476_v0  ;;  %p2445_p2 = scmp.ne.s32.totalorder %s1465_s16, %s2444_s17  ;;  %p2450_p4 = scmp.lt.s32.totalorder %s2444_s17, %s2444_s17 }
  0x3e   :  { %p2451_p5 = por %p2450_p4, %p2449_p3 }
  0x3f   :  { %1917 = vmatpush1.bf16.msra.mxu0 %v2581_v53  ;;  %1940 = vmatpush3.bf16.msra.mxu1 %v2587_v59 }
  0x40   :  { %1919 = vmatprep.subr.bf16.mxu0 %v2584_v54  ;;  %1941 = vmatprep.subr.bf16.mxu1 %v2476_v0  ;;  %p2452_p6 = pnand %p2451_p5, %p2445_p2 }
  0x43   :  { %1921 = vmatpush1.bf16.msra.mxu0 %v2591_v62  ;;  %1943 = vmatpush3.bf16.msra.mxu1 %v2597_v4 }
  0x44   :  { %1923 = vmatprep.subr.bf16.mxu0 %v2594_v63  ;;  %1944 = vmatprep.subr.bf16.mxu1 %v2476_v0 }
  0x47   :  { %1925 = vmatpush1.bf16.msra.mxu0 %v2601_v8  ;;  %1946 = vmatpush3.bf16.msra.mxu1 %v2605_v11 }
  0x48   :  { %1951 = vmatprep.subr.bf16.mxu0 %v2535_v5  ;;  %1947 = vmatprep.subr.bf16.mxu1 %v2476_v0 }
  0x4a   :  { %189 = vmatmul.mubr.f32.vlgmr.msra.gmra.mrb[0].mxu0 %v2477_v1 }
  0x4b   :  { %1953 = vmatpush1.bf16.msra.mxu0 %v2537_v9  ;;  %353 = vmatprep.mubr.f32.mxu0 %v2477_v1 }
  0x4c   :  { %1955 = vmatprep.subr.bf16.mxu0 %v2539_v10  ;;  %1949 = vmatpush3.bf16.msra.mxu1 %v2611_v14 }
  0x4d   :  { %1982 = vmatprep.subr.bf16.mxu1 %v2476_v0 }
  0x4f   :  { %1957 = vmatpush1.bf16.msra.mxu0 %v2543_v15  ;;  %1647 = vmatmul.mubr.f32.vlgmr.msra.gmra.mrb[0].mxu1 %v2477_v1 }
  0x50   :  { %1959 = vmatprep.subr.bf16.mxu0 %v2546_v16  ;;  %1984 = vmatpush3.bf16.msra.mxu1 %v2551_v24 }
  0x51   :  { %1681 = vmatprep.mubr.msk.f32.mxu1 %vm2478_vm0, %v2477_v1  ;;  %1985 = vmatprep.subr.bf16.mxu1 %v2476_v0 }
  0x53   :  { %1961 = vmatpush1.bf16.msra.mxu0 %v2549_v23 }
  0x54   :  { %1963 = vmatprep.subr.bf16.mxu0 %v2554_v26  ;;  %1987 = vmatpush3.bf16.msra.mxu1 %v2557_v32 }
  0x55   :  { %1988 = vmatprep.subr.bf16.mxu1 %v2476_v0 }
  0x57   :  { %1965 = vmatpush1.bf16.msra.mxu0 %v2561_v35 }
  0x58   :  { %1967 = vmatprep.subr.bf16.mxu0 %v2564_v36  ;;  %1990 = vmatpush3.bf16.msra.mxu1 %v2567_v41 }
  0x59   :  { %1991 = vmatprep.subr.bf16.mxu1 %v2476_v0 }
  0x5b   :  { %1969 = vmatpush1.bf16.msra.mxu0 %v2571_v44 }
  0x5c   :  { %1971 = vmatprep.subr.bf16.mxu0 %v2574_v45  ;;  %1993 = vmatpush3.bf16.msra.mxu1 %v2577_v50 }
  0x5d   :  { %1994 = vmatprep.subr.bf16.mxu1 %v2476_v0 }
  0x5f   :  { %1973 = vmatpush1.bf16.msra.mxu0 %v2581_v53 }
  0x60   :  { %1975 = vmatprep.subr.bf16.mxu0 %v2584_v54  ;;  %1996 = vmatpush3.bf16.msra.mxu1 %v2587_v59 }
  0x61   :  { %1997 = vmatprep.subr.bf16.mxu1 %v2476_v0 }
  0x63   :  { %1977 = vmatpush1.bf16.msra.mxu0 %v2591_v62 }
  0x64   :  { %1979 = vmatprep.subr.bf16.mxu0 %v2594_v63  ;;  %1999 = vmatpush3.bf16.msra.mxu1 %v2597_v4 }
  0x65   :  { %2000 = vmatprep.subr.bf16.mxu1 %v2476_v0 }
  0x67   :  { %1981 = vmatpush1.bf16.msra.mxu0 %v2601_v8 }
  0x68   :  { %2007 = vmatprep.subr.bf16.mxu0 %v2535_v5  ;;  %2002 = vmatpush3.bf16.msra.mxu1 %v2605_v11 }
  0x69   :  { %2003 = vmatprep.subr.bf16.mxu1 %v2476_v0 }
  0x6c   :  { %2005 = vmatpush3.bf16.msra.mxu1 %v2611_v14 }
  0x6d   :  { %2038 = vmatprep.subr.bf16.mxu1 %v2476_v0 }
 0x11d   :  { %v190_v28 = vpop.f32.mrb[0].mxu0 }
 0x11e   :  { %v271_v29 = vadd.f32 %v268_v25, %v190_v28  ;;  %v192_v30 = vpop.f32.mrb[1].mxu0  ;;  %v432_v28 = vld [vmem:[#allocation3 + $0x20] sm:$0xff] }
 0x11f   :  { %v272_v40 = vadd.f32 %v269_v37, %v192_v30  ;;  %v433_v37 = vld [vmem:[#allocation3 + $0x28] sm:$0xff] }
 0x120   :  { %v273_v33 = vmul.f32 0.5, %v271_v29  ;;  %v435_v29 = vadd.f32 %v432_v28, %v2659_v31 }
 0x121   :  { %v277_v46 = vmul.f32 0.5, %v272_v40 }
 0x122   :  { %2352 = vtanh.f32 %v273_v33  ;;  %v261_v38 = vpop.f32.mrb[0].mxu1 }
 0x123   :  { %v1648_v39 = vpop.f32.mrb[1].mxu1  ;;  %v281_v52 = vadd.f32 %v2665_v43, %v261_v38  ;;  %2354 = vtanh.f32 %v277_v46 }
 0x124   :  { %v436_v39 = vadd.f32 %v433_v37, %v2667_v47 }
 0x12c   :  { %v2353_v48 = vpop.eup %2352 }
 0x12d   :  { %v275_v51 = vmul.f32 0.5, %v2353_v48  ;;  %v2355_v60 = vpop.eup %2354 }
 0x12e   :  { %v279_v61 = vmul.f32 0.5, %v2355_v60  ;;  %v598_v60 = vld [vmem:[#allocation3 + $0x30] sm:$0xff] }
 0x12f   :  { %v276_v56 = vadd.f32 0.5, %v275_v51 }
 0x130   :  { %v280_v3 = vadd.f32 0.5, %v279_v61  ;;  %v601_v61 = vadd.f32 %v598_v60, %v2656_v21 }
 0x131   :  { %v282_v57 = vmul.f32 %v281_v52, %v276_v56 }
 0x133   :  { %v283_v58 = vadd.f32 %v282_v57, %v270_v55 }
 0x135   :  { %2356 = vtanh.f32 %v283_v58 }
 0x13f   :  { %v2357_v2 = vpop.eup %2356 }
 0x140   :  { %v285_v6 = vsub.f32 0.0, %v2357_v2 }
 0x142   :  { %v286_v7 = vmul.f32 %v285_v6, %v280_v3 }
 0x144   :  { %v2671_v12 = vadd.f32 %v2357_v2, %v286_v7 }
 0x146   :  { %288 = vst [vmem:[#allocation8] sm:$0xff] %v2671_v12  ;;  %354 = vmatmul.mubr.f32.vlgmr.msra.gmra.mrb[2].mxu0 %v2671_v12  ;;  %1682 = vmatmul.mubr.f32.vlgmr.msra.gmra.mrb[2].mxu1 %v2671_v12 }
 0x147   :  { %2009 = vmatpush1.bf16.msra.mxu0 %v2537_v9  ;;  %2040 = vmatpush3.bf16.msra.mxu1 %v2551_v24 }
 0x148   :  { %2011 = vmatprep.subr.bf16.mxu0 %v2539_v10  ;;  %2041 = vmatprep.subr.bf16.mxu1 %v2476_v0 }
 0x149   :  { %520 = vmatprep.mubr.f32.mxu0 %v2477_v1  ;;  %1716 = vmatprep.mubr.msk.f32.mxu1 %vm2478_vm0, %v2477_v1 }
 0x14b   :  { %2013 = vmatpush1.bf16.msra.mxu0 %v2543_v15  ;;  %2043 = vmatpush3.bf16.msra.mxu1 %v2557_v32 }
 0x14c   :  { %2015 = vmatprep.subr.bf16.mxu0 %v2546_v16  ;;  %2044 = vmatprep.subr.bf16.mxu1 %v2476_v0 }
 0x14f   :  { %2017 = vmatpush1.bf16.msra.mxu0 %v2549_v23  ;;  %2046 = vmatpush3.bf16.msra.mxu1 %v2567_v41 }
 0x150   :  { %2019 = vmatprep.subr.bf16.mxu0 %v2554_v26  ;;  %2047 = vmatprep.subr.bf16.mxu1 %v2476_v0 }
 0x153   :  { %2021 = vmatpush1.bf16.msra.mxu0 %v2561_v35  ;;  %2049 = vmatpush3.bf16.msra.mxu1 %v2577_v50 }
 0x154   :  { %2023 = vmatprep.subr.bf16.mxu0 %v2564_v36  ;;  %2050 = vmatprep.subr.bf16.mxu1 %v2476_v0 }
 0x157   :  { %2025 = vmatpush1.bf16.msra.mxu0 %v2571_v44  ;;  %2052 = vmatpush3.bf16.msra.mxu1 %v2587_v59 }
 0x158   :  { %2027 = vmatprep.subr.bf16.mxu0 %v2574_v45  ;;  %2053 = vmatprep.subr.bf16.mxu1 %v2476_v0 }
 0x15b   :  { %2029 = vmatpush1.bf16.msra.mxu0 %v2581_v53  ;;  %2055 = vmatpush3.bf16.msra.mxu1 %v2597_v4 }
 0x15c   :  { %2031 = vmatprep.subr.bf16.mxu0 %v2584_v54  ;;  %2056 = vmatprep.subr.bf16.mxu1 %v2476_v0 }
 0x15f   :  { %2033 = vmatpush1.bf16.msra.mxu0 %v2591_v62  ;;  %2058 = vmatpush3.bf16.msra.mxu1 %v2605_v11 }
 0x160   :  { %2035 = vmatprep.subr.bf16.mxu0 %v2594_v63  ;;  %2059 = vmatprep.subr.bf16.mxu1 %v2476_v0 }
 0x163   :  { %2037 = vmatpush1.bf16.msra.mxu0 %v2601_v8  ;;  %2061 = vmatpush3.bf16.msra.mxu1 %v2611_v14 }
 0x164   :  { %2063 = vmatprep.subr.bf16.mxu0 %v2535_v5  ;;  %2094 = vmatprep.subr.bf16.mxu1 %v2476_v0 }
 0x219   :  { %v355_v18 = vpop.f32.mrb[2].mxu0  ;;  %v426_v19 = vpop.f32.mrb[2].mxu1 }
 0x21a   :  { %v437_v20 = vadd.f32 %v434_v17, %v355_v18  ;;  %v357_v22 = vpop.f32.mrb[3].mxu0  ;;  %v1683_v25 = vpop.f32.mrb[3].mxu1  ;;  %v447_v42 = vadd.f32 %v2665_v43, %v426_v19  ;;  %v599_v17 = vld [vmem:[#allocation3 + $0x38] sm:$0xff] }
 0x21b   :  { %v438_v30 = vadd.f32 %v435_v29, %v357_v22  ;;  %v602_v18 = vadd.f32 %v599_v17, %v2659_v31  ;;  %v600_v25 = vld [vmem:[#allocation3 + $0x40] sm:$0xff] }
 0x21c   :  { %v439_v27 = vmul.f32 0.5, %v437_v20  ;;  %v603_v28 = vadd.f32 %v600_v25, %v2667_v47 }
 0x21d   :  { %v443_v33 = vmul.f32 0.5, %v438_v30 }
 0x21e   :  { %2358 = vtanh.f32 %v439_v27 }
 0x21f   :  { %2360 = vtanh.f32 %v443_v33 }
 0x228   :  { %v2359_v34 = vpop.eup %2358 }
 0x229   :  { %v441_v38 = vmul.f32 0.5, %v2359_v34  ;;  %v2361_v49 = vpop.eup %2360 }
 0x22a   :  { %v445_v51 = vmul.f32 0.5, %v2361_v49  ;;  %v765_v49 = vld [vmem:[#allocation3 + $0x48] sm:$0xff] }
 0x22b   :  { %v442_v40 = vadd.f32 0.5, %v441_v38 }
 0x22c   :  { %v446_v55 = vadd.f32 0.5, %v445_v51  ;;  %v768_v51 = vadd.f32 %v765_v49, %v2656_v21 }
 0x22d   :  { %v448_v46 = vmul.f32 %v447_v42, %v442_v40 }
 0x22f   :  { %v449_v48 = vadd.f32 %v448_v46, %v436_v39 }
 0x231   :  { %2362 = vtanh.f32 %v449_v48 }
 0x23b   :  { %v2363_v52 = vpop.eup %2362 }
 0x23c   :  { %v451_v56 = vsub.f32 %v2671_v12, %v2363_v52 }
 0x23e   :  { %v452_v57 = vmul.f32 %v451_v56, %v446_v55 }
 0x240   :  { %v2716_v58 = vadd.f32 %v2363_v52, %v452_v57 }
 0x242   :  { %455 = vst [vmem:[#allocation8 + $0x8] sm:$0xff] %v2716_v58  ;;  %521 = vmatmul.mubr.f32.vlgmr.msra.gmra.mrb[4].mxu0 %v2716_v58  ;;  %1717 = vmatmul.mubr.f32.vlgmr.msra.gmra.mrb[4].mxu1 %v2716_v58 }
 0x243   :  { %2065 = vmatpush1.bf16.msra.mxu0 %v2537_v9  ;;  %2096 = vmatpush3.bf16.msra.mxu1 %v2551_v24 }
 0x244   :  { %2067 = vmatprep.subr.bf16.mxu0 %v2539_v10  ;;  %2097 = vmatprep.subr.bf16.mxu1 %v2476_v0 }
 0x245   :  { %687 = vmatprep.mubr.f32.mxu0 %v2477_v1  ;;  %1751 = vmatprep.mubr.msk.f32.mxu1 %vm2478_vm0, %v2477_v1 }
 0x247   :  { %2069 = vmatpush1.bf16.msra.mxu0 %v2543_v15  ;;  %2099 = vmatpush3.bf16.msra.mxu1 %v2557_v32 }
 0x248   :  { %2071 = vmatprep.subr.bf16.mxu0 %v2546_v16  ;;  %2100 = vmatprep.subr.bf16.mxu1 %v2476_v0 }
 0x24b   :  { %2073 = vmatpush1.bf16.msra.mxu0 %v2549_v23  ;;  %2102 = vmatpush3.bf16.msra.mxu1 %v2567_v41 }
 0x24c   :  { %2075 = vmatprep.subr.bf16.mxu0 %v2554_v26  ;;  %2103 = vmatprep.subr.bf16.mxu1 %v2476_v0 }
 0x24f   :  { %2077 = vmatpush1.bf16.msra.mxu0 %v2561_v35  ;;  %2105 = vmatpush3.bf16.msra.mxu1 %v2577_v50 }
 0x250   :  { %2079 = vmatprep.subr.bf16.mxu0 %v2564_v36  ;;  %2106 = vmatprep.subr.bf16.mxu1 %v2476_v0 }
 0x253   :  { %2081 = vmatpush1.bf16.msra.mxu0 %v2571_v44  ;;  %2108 = vmatpush3.bf16.msra.mxu1 %v2587_v59 }
 0x254   :  { %2083 = vmatprep.subr.bf16.mxu0 %v2574_v45  ;;  %2109 = vmatprep.subr.bf16.mxu1 %v2476_v0 }
 0x257   :  { %2085 = vmatpush1.bf16.msra.mxu0 %v2581_v53  ;;  %2111 = vmatpush3.bf16.msra.mxu1 %v2597_v4 }
 0x258   :  { %2087 = vmatprep.subr.bf16.mxu0 %v2584_v54  ;;  %2112 = vmatprep.subr.bf16.mxu1 %v2476_v0 }
 0x25b   :  { %2089 = vmatpush1.bf16.msra.mxu0 %v2591_v62  ;;  %2114 = vmatpush3.bf16.msra.mxu1 %v2605_v11 }
 0x25c   :  { %2091 = vmatprep.subr.bf16.mxu0 %v2594_v63  ;;  %2115 = vmatprep.subr.bf16.mxu1 %v2476_v0 }
 0x25f   :  { %2093 = vmatpush1.bf16.msra.mxu0 %v2601_v8  ;;  %2117 = vmatpush3.bf16.msra.mxu1 %v2611_v14 }
 0x260   :  { %2119 = vmatprep.subr.bf16.mxu0 %v2535_v5  ;;  %2150 = vmatprep.subr.bf16.mxu1 %v2476_v0 }
 0x315   :  { %v522_v2 = vpop.f32.mrb[4].mxu0  ;;  %v593_v3 = vpop.f32.mrb[4].mxu1 }
 0x316   :  { %v604_v6 = vadd.f32 %v601_v61, %v522_v2  ;;  %v524_v7 = vpop.f32.mrb[5].mxu0  ;;  %v1718_v12 = vpop.f32.mrb[5].mxu1  ;;  %v614_v30 = vadd.f32 %v2665_v43, %v593_v3  ;;  %v766_v61 = vld [vmem:[#allocation3 + $0x50] sm:$0xff] }
 0x317   :  { %v605_v19 = vadd.f32 %v602_v18, %v524_v7  ;;  %v769_v2 = vadd.f32 %v766_v61, %v2659_v31  ;;  %v767_v12 = vld [vmem:[#allocation3 + $0x58] sm:$0xff] }
 0x318   :  { %v606_v13 = vmul.f32 0.5, %v604_v6  ;;  %v770_v17 = vadd.f32 %v767_v12, %v2667_v47 }
 0x319   :  { %v610_v20 = vmul.f32 0.5, %v605_v19 }
 0x31a   :  { %2364 = vtanh.f32 %v606_v13 }
 0x31b   :  { %2366 = vtanh.f32 %v610_v20 }
 0x324   :  { %v2365_v22 = vpop.eup %2364 }
 0x325   :  { %v608_v27 = vmul.f32 0.5, %v2365_v22  ;;  %v2367_v37 = vpop.eup %2366 }
 0x326   :  { %v612_v38 = vmul.f32 0.5, %v2367_v37  ;;  %v932_v37 = vld [vmem:[#allocation3 + $0x60] sm:$0xff] }
 0x327   :  { %v609_v29 = vadd.f32 0.5, %v608_v27 }
 0x328   :  { %v613_v40 = vadd.f32 0.5, %v612_v38  ;;  %v935_v38 = vadd.f32 %v932_v37, %v2656_v21 }
 0x329   :  { %v615_v33 = vmul.f32 %v614_v30, %v609_v29 }
 0x32b   :  { %v616_v34 = vadd.f32 %v615_v33, %v603_v28 }
 0x32d   :  { %2368 = vtanh.f32 %v616_v34 }
 0x337   :  { %v2369_v39 = vpop.eup %2368 }
 0x338   :  { %v618_v42 = vsub.f32 %v2716_v58, %v2369_v39 }
 0x33a   :  { %v619_v46 = vmul.f32 %v618_v42, %v613_v40 }
 0x33c   :  { %v2761_v48 = vadd.f32 %v2369_v39, %v619_v46 }
 0x33e   :  { %622 = vst [vmem:[#allocation8 + $0x10] sm:$0xff] %v2761_v48  ;;  %688 = vmatmul.mubr.f32.vlgmr.msra.gmra.mrb[6].mxu0 %v2761_v48  ;;  %1752 = vmatmul.mubr.f32.vlgmr.msra.gmra.mrb[6].mxu1 %v2761_v48 }
 0x33f   :  { %2121 = vmatpush1.bf16.msra.mxu0 %v2537_v9  ;;  %2152 = vmatpush3.bf16.msra.mxu1 %v2551_v24 }
 0x340   :  { %2123 = vmatprep.subr.bf16.mxu0 %v2539_v10  ;;  %2153 = vmatprep.subr.bf16.mxu1 %v2476_v0 }
 0x341   :  { %854 = vmatprep.mubr.f32.mxu0 %v2477_v1  ;;  %1786 = vmatprep.mubr.msk.f32.mxu1 %vm2478_vm0, %v2477_v1 }
 0x343   :  { %2125 = vmatpush1.bf16.msra.mxu0 %v2543_v15  ;;  %2155 = vmatpush3.bf16.msra.mxu1 %v2557_v32 }
 0x344   :  { %2127 = vmatprep.subr.bf16.mxu0 %v2546_v16  ;;  %2156 = vmatprep.subr.bf16.mxu1 %v2476_v0 }
 0x347   :  { %2129 = vmatpush1.bf16.msra.mxu0 %v2549_v23  ;;  %2158 = vmatpush3.bf16.msra.mxu1 %v2567_v41 }
 0x348   :  { %2131 = vmatprep.subr.bf16.mxu0 %v2554_v26  ;;  %2159 = vmatprep.subr.bf16.mxu1 %v2476_v0 }
 0x34b   :  { %2133 = vmatpush1.bf16.msra.mxu0 %v2561_v35  ;;  %2161 = vmatpush3.bf16.msra.mxu1 %v2577_v50 }
 0x34c   :  { %2135 = vmatprep.subr.bf16.mxu0 %v2564_v36  ;;  %2162 = vmatprep.subr.bf16.mxu1 %v2476_v0 }
 0x34f   :  { %2137 = vmatpush1.bf16.msra.mxu0 %v2571_v44  ;;  %2164 = vmatpush3.bf16.msra.mxu1 %v2587_v59 }
 0x350   :  { %2139 = vmatprep.subr.bf16.mxu0 %v2574_v45  ;;  %2165 = vmatprep.subr.bf16.mxu1 %v2476_v0 }
 0x353   :  { %2141 = vmatpush1.bf16.msra.mxu0 %v2581_v53  ;;  %2167 = vmatpush3.bf16.msra.mxu1 %v2597_v4 }
 0x354   :  { %2143 = vmatprep.subr.bf16.mxu0 %v2584_v54  ;;  %2168 = vmatprep.subr.bf16.mxu1 %v2476_v0 }
 0x357   :  { %2145 = vmatpush1.bf16.msra.mxu0 %v2591_v62  ;;  %2170 = vmatpush3.bf16.msra.mxu1 %v2605_v11 }
 0x358   :  { %2147 = vmatprep.subr.bf16.mxu0 %v2594_v63  ;;  %2171 = vmatprep.subr.bf16.mxu1 %v2476_v0 }
 0x35b   :  { %2149 = vmatpush1.bf16.msra.mxu0 %v2601_v8  ;;  %2173 = vmatpush3.bf16.msra.mxu1 %v2611_v14 }
 0x35c   :  { %2175 = vmatprep.subr.bf16.mxu0 %v2535_v5  ;;  %2206 = vmatprep.subr.bf16.mxu1 %v2476_v0 }
 0x411   :  { %v689_v52 = vpop.f32.mrb[6].mxu0  ;;  %v760_v55 = vpop.f32.mrb[6].mxu1 }
 0x412   :  { %v771_v56 = vadd.f32 %v768_v51, %v689_v52  ;;  %v691_v57 = vpop.f32.mrb[7].mxu0  ;;  %v1753_v58 = vpop.f32.mrb[7].mxu1  ;;  %v781_v19 = vadd.f32 %v2665_v43, %v760_v55  ;;  %v933_v51 = vld [vmem:[#allocation3 + $0x68] sm:$0xff] }
 0x413   :  { %v772_v3 = vadd.f32 %v769_v2, %v691_v57  ;;  %v936_v52 = vadd.f32 %v933_v51, %v2659_v31  ;;  %v934_v58 = vld [vmem:[#allocation3 + $0x70] sm:$0xff] }
 0x414   :  { %v773_v60 = vmul.f32 0.5, %v771_v56  ;;  %v937_v61 = vadd.f32 %v934_v58, %v2667_v47 }
 0x415   :  { %v777_v6 = vmul.f32 0.5, %v772_v3 }
 0x416   :  { %2370 = vtanh.f32 %v773_v60 }
 0x417   :  { %2372 = vtanh.f32 %v777_v6 }
 0x420   :  { %v2371_v7 = vpop.eup %2370 }
 0x421   :  { %v775_v13 = vmul.f32 0.5, %v2371_v7  ;;  %v2373_v25 = vpop.eup %2372 }
 0x422   :  { %v779_v27 = vmul.f32 0.5, %v2373_v25  ;;  %v1099_v25 = vld [vmem:[#allocation3 + $0x78] sm:$0xff] }
 0x423   :  { %v776_v18 = vadd.f32 0.5, %v775_v13 }
 0x424   :  { %v780_v29 = vadd.f32 0.5, %v779_v27  ;;  %v1102_v27 = vadd.f32 %v1099_v25, %v2656_v21 }
 0x425   :  { %v782_v20 = vmul.f32 %v781_v19, %v776_v18 }
 0x427   :  { %v783_v22 = vadd.f32 %v782_v20, %v770_v17 }
 0x429   :  { %2374 = vtanh.f32 %v783_v22 }
 0x433   :  { %v2375_v28 = vpop.eup %2374 }
 0x434   :  { %v785_v30 = vsub.f32 %v2761_v48, %v2375_v28 }
 0x436   :  { %v786_v33 = vmul.f32 %v785_v30, %v780_v29 }
 0x438   :  { %v2806_v34 = vadd.f32 %v2375_v28, %v786_v33 }
 0x43a   :  { %789 = vst [vmem:[#allocation8 + $0x18] sm:$0xff] %v2806_v34  ;;  %855 = vmatmul.mubr.f32.vlgmr.msra.gmra.mrb[8].mxu0 %v2806_v34  ;;  %1787 = vmatmul.mubr.f32.vlgmr.msra.gmra.mrb[8].mxu1 %v2806_v34 }
 0x43b   :  { %2177 = vmatpush1.bf16.msra.mxu0 %v2537_v9  ;;  %2208 = vmatpush3.bf16.msra.mxu1 %v2551_v24 }
 0x43c   :  { %2179 = vmatprep.subr.bf16.mxu0 %v2539_v10  ;;  %2209 = vmatprep.subr.bf16.mxu1 %v2476_v0 }
 0x43d   :  { %1021 = vmatprep.mubr.f32.mxu0 %v2477_v1  ;;  %1821 = vmatprep.mubr.msk.f32.mxu1 %vm2478_vm0, %v2477_v1 }
 0x43f   :  { %2181 = vmatpush1.bf16.msra.mxu0 %v2543_v15  ;;  %2211 = vmatpush3.bf16.msra.mxu1 %v2557_v32 }
 0x440   :  { %2183 = vmatprep.subr.bf16.mxu0 %v2546_v16  ;;  %2212 = vmatprep.subr.bf16.mxu1 %v2476_v0 }
 0x443   :  { %2185 = vmatpush1.bf16.msra.mxu0 %v2549_v23  ;;  %2214 = vmatpush3.bf16.msra.mxu1 %v2567_v41 }
 0x444   :  { %2187 = vmatprep.subr.bf16.mxu0 %v2554_v26  ;;  %2215 = vmatprep.subr.bf16.mxu1 %v2476_v0 }
 0x447   :  { %2189 = vmatpush1.bf16.msra.mxu0 %v2561_v35  ;;  %2217 = vmatpush3.bf16.msra.mxu1 %v2577_v50 }
 0x448   :  { %2191 = vmatprep.subr.bf16.mxu0 %v2564_v36  ;;  %2218 = vmatprep.subr.bf16.mxu1 %v2476_v0 }
 0x44b   :  { %2193 = vmatpush1.bf16.msra.mxu0 %v2571_v44  ;;  %2220 = vmatpush3.bf16.msra.mxu1 %v2587_v59 }
 0x44c   :  { %2195 = vmatprep.subr.bf16.mxu0 %v2574_v45  ;;  %2221 = vmatprep.subr.bf16.mxu1 %v2476_v0 }
 0x44f   :  { %2197 = vmatpush1.bf16.msra.mxu0 %v2581_v53  ;;  %2223 = vmatpush3.bf16.msra.mxu1 %v2597_v4 }
 0x450   :  { %2199 = vmatprep.subr.bf16.mxu0 %v2584_v54  ;;  %2224 = vmatprep.subr.bf16.mxu1 %v2476_v0 }
 0x453   :  { %2201 = vmatpush1.bf16.msra.mxu0 %v2591_v62  ;;  %2226 = vmatpush3.bf16.msra.mxu1 %v2605_v11 }
 0x454   :  { %2203 = vmatprep.subr.bf16.mxu0 %v2594_v63  ;;  %2227 = vmatprep.subr.bf16.mxu1 %v2476_v0 }
 0x457   :  { %2205 = vmatpush1.bf16.msra.mxu0 %v2601_v8  ;;  %2229 = vmatpush3.bf16.msra.mxu1 %v2611_v14 }
 0x458   :  { %2231 = vmatprep.subr.bf16.mxu0 %v2535_v5  ;;  %2262 = vmatprep.subr.bf16.mxu1 %v2476_v0 }
 0x50d   :  { %v856_v39 = vpop.f32.mrb[8].mxu0  ;;  %v927_v40 = vpop.f32.mrb[8].mxu1 }
 0x50e   :  { %v938_v42 = vadd.f32 %v935_v38, %v856_v39  ;;  %v858_v46 = vpop.f32.mrb[9].mxu0  ;;  %v1788_v48 = vpop.f32.mrb[9].mxu1  ;;  %v948_v3 = vadd.f32 %v2665_v43, %v927_v40  ;;  %v1100_v38 = vld [vmem:[#allocation3 + $0x80] sm:$0xff] }
 0x50f   :  { %v939_v55 = vadd.f32 %v936_v52, %v858_v46  ;;  %v1103_v39 = vadd.f32 %v1100_v38, %v2659_v31  ;;  %v1101_v48 = vld [vmem:[#allocation3 + $0x88] sm:$0xff] }
 0x510   :  { %v940_v49 = vmul.f32 0.5, %v938_v42 }
 0x511   :  { %v944_v56 = vmul.f32 0.5, %v939_v55 }
 0x512   :  { %2376 = vtanh.f32 %v940_v49  ;;  %v1104_v49 = vadd.f32 %v1101_v48, %v2667_v47 }
 0x513   :  { %2378 = vtanh.f32 %v944_v56 }
 0x51c   :  { %v2377_v57 = vpop.eup %2376 }
 0x51d   :  { %v942_v60 = vmul.f32 0.5, %v2377_v57  ;;  %v2379_v12 = vpop.eup %2378 }
 0x51e   :  { %v946_v13 = vmul.f32 0.5, %v2379_v12 }
 0x51f   :  { %v943_v2 = vadd.f32 0.5, %v942_v60 }
 0x520   :  { %v947_v18 = vadd.f32 0.5, %v946_v13  ;;  %v1433_v13 = vld [vmem:[#allocation3 + $0xa8] sm:$0xff] }
 0x521   :  { %v949_v6 = vmul.f32 %v948_v3, %v943_v2 }
 0x523   :  { %v950_v7 = vadd.f32 %v949_v6, %v937_v61 }
 0x525   :  { %2380 = vtanh.f32 %v950_v7 }
 0x52f   :  { %v2381_v17 = vpop.eup %2380 }
 0x530   :  { %v952_v19 = vsub.f32 %v2806_v34, %v2381_v17 }
 0x532   :  { %v953_v20 = vmul.f32 %v952_v19, %v947_v18 }
 0x534   :  { %v2851_v22 = vadd.f32 %v2381_v17, %v953_v20  ;;  %v1436_v17 = vadd.f32 %v1433_v13, %v2656_v21 }
 0x536   :  { %956 = vst [vmem:[#allocation8 + $0x20] sm:$0xff] %v2851_v22  ;;  %1022 = vmatmul.mubr.f32.vlgmr.msra.gmra.mrb[10].mxu0 %v2851_v22  ;;  %1822 = vmatmul.mubr.f32.vlgmr.msra.gmra.mrb[10].mxu1 %v2851_v22 }
 0x537   :  { %2233 = vmatpush1.bf16.msra.mxu0 %v2537_v9  ;;  %2264 = vmatpush3.bf16.msra.mxu1 %v2551_v24 }
 0x538   :  { %2235 = vmatprep.subr.bf16.mxu0 %v2539_v10  ;;  %2265 = vmatprep.subr.bf16.mxu1 %v2476_v0 }
 0x539   :  { %1188 = vmatprep.mubr.f32.mxu0 %v2477_v1  ;;  %1856 = vmatprep.mubr.msk.f32.mxu1 %vm2478_vm0, %v2477_v1 }
 0x53b   :  { %2237 = vmatpush1.bf16.msra.mxu0 %v2543_v15  ;;  %2267 = vmatpush3.bf16.msra.mxu1 %v2557_v32 }
 0x53c   :  { %2239 = vmatprep.subr.bf16.mxu0 %v2546_v16  ;;  %2268 = vmatprep.subr.bf16.mxu1 %v2476_v0 }
 0x53f   :  { %2241 = vmatpush1.bf16.msra.mxu0 %v2549_v23  ;;  %2270 = vmatpush3.bf16.msra.mxu1 %v2567_v41 }
 0x540   :  { %2243 = vmatprep.subr.bf16.mxu0 %v2554_v26  ;;  %2271 = vmatprep.subr.bf16.mxu1 %v2476_v0 }
 0x543   :  { %2245 = vmatpush1.bf16.msra.mxu0 %v2561_v35  ;;  %2273 = vmatpush3.bf16.msra.mxu1 %v2577_v50 }
 0x544   :  { %2247 = vmatprep.subr.bf16.mxu0 %v2564_v36  ;;  %2274 = vmatprep.subr.bf16.mxu1 %v2476_v0 }
 0x547   :  { %2249 = vmatpush1.bf16.msra.mxu0 %v2571_v44  ;;  %2276 = vmatpush3.bf16.msra.mxu1 %v2587_v59 }
 0x548   :  { %2251 = vmatprep.subr.bf16.mxu0 %v2574_v45  ;;  %2277 = vmatprep.subr.bf16.mxu1 %v2476_v0 }
 0x54b   :  { %2253 = vmatpush1.bf16.msra.mxu0 %v2581_v53  ;;  %2279 = vmatpush3.bf16.msra.mxu1 %v2597_v4 }
 0x54c   :  { %2255 = vmatprep.subr.bf16.mxu0 %v2584_v54  ;;  %2280 = vmatprep.subr.bf16.mxu1 %v2476_v0 }
 0x54f   :  { %2257 = vmatpush1.bf16.msra.mxu0 %v2591_v62  ;;  %2282 = vmatpush3.bf16.msra.mxu1 %v2605_v11 }
 0x550   :  { %2259 = vmatprep.subr.bf16.mxu0 %v2594_v63  ;;  %2283 = vmatprep.subr.bf16.mxu1 %v2476_v0 }
 0x553   :  { %2261 = vmatpush1.bf16.msra.mxu0 %v2601_v8  ;;  %2285 = vmatpush3.bf16.msra.mxu1 %v2611_v14 }
 0x554   :  { %2287 = vmatprep.subr.bf16.mxu0 %v2535_v5  ;;  %2318 = vmatprep.subr.bf16.mxu1 %v2476_v0 }
 0x609   :  { %v1023_v28 = vpop.f32.mrb[10].mxu0  ;;  %v1094_v29 = vpop.f32.mrb[10].mxu1 }
 0x60a   :  { %v1105_v30 = vadd.f32 %v1102_v27, %v1023_v28  ;;  %v1025_v33 = vpop.f32.mrb[11].mxu0  ;;  %v1823_v34 = vpop.f32.mrb[11].mxu1  ;;  %v1115_v52 = vadd.f32 %v2665_v43, %v1094_v29  ;;  %v1434_v28 = vld [vmem:[#allocation3 + $0xb0] sm:$0xff] }
 0x60b   :  { %v1106_v40 = vadd.f32 %v1103_v39, %v1025_v33  ;;  %v1437_v29 = vadd.f32 %v1434_v28, %v2659_v31 }
 0x60c   :  { %v1107_v37 = vmul.f32 0.5, %v1105_v30 }
 0x60d   :  { %v1111_v42 = vmul.f32 0.5, %v1106_v40 }
 0x60e   :  { %2382 = vtanh.f32 %v1107_v37  ;;  %v1435_v37 = vld [vmem:[#allocation3 + $0xb8] sm:$0xff] }
 0x60f   :  { %2384 = vtanh.f32 %v1111_v42  ;;  %v1438_v39 = vadd.f32 %v1435_v37, %v2667_v47 }
 0x618   :  { %v2383_v46 = vpop.eup %2382 }
 0x619   :  { %v1109_v5 = vmul.f32 0.5, %v2383_v46  ;;  %v2385_v57 = vpop.eup %2384 }
 0x61a   :  { %v1113_v58 = vmul.f32 0.5, %v2385_v57 }
 0x61b   :  { %v1110_v51 = vadd.f32 0.5, %v1109_v5 }
 0x61c   :  { %v1114_v61 = vadd.f32 0.5, %v1113_v58 }
 0x61d   :  { %v1116_v55 = vmul.f32 %v1115_v52, %v1110_v51 }
 0x61f   :  { %v1117_v56 = vadd.f32 %v1116_v55, %v1104_v49 }
 0x621   :  { %2386 = vtanh.f32 %v1117_v56 }
 0x62b   :  { %v2387_v60 = vpop.eup %2386 }
 0x62c   :  { %v1119_v2 = vsub.f32 %v2851_v22, %v2387_v60 }
 0x62e   :  { %v1120_v3 = vmul.f32 %v1119_v2, %v1114_v61 }
 0x630   :  { %v2896_v6 = vadd.f32 %v2387_v60, %v1120_v3 }
 0x632   :  { %1123 = vst [vmem:[#allocation8 + $0x28] sm:$0xff] %v2896_v6  ;;  %1189 = vmatmul.mubr.f32.vlgmr.msra.gmra.mrb[12].mxu0 %v2896_v6  ;;  %1857 = vmatmul.mubr.f32.vlgmr.msra.gmra.mrb[12].mxu1 %v2896_v6 }
 0x633   :  { %2289 = vmatpush1.bf16.msra.mxu0 %v2537_v9  ;;  %2320 = vmatpush3.bf16.msra.mxu1 %v2551_v24 }
 0x634   :  { %2291 = vmatprep.subr.bf16.mxu0 %v2539_v10  ;;  %2321 = vmatprep.subr.bf16.mxu1 %v2476_v0 }
 0x635   :  { %1355 = vmatprep.mubr.f32.mxu0 %v2477_v1  ;;  %1891 = vmatprep.mubr.msk.f32.mxu1 %vm2478_vm0, %v2477_v1  ;;  %v1266_v1 = vld [vmem:[#allocation3 + $0x90] sm:$0xff] }
 0x636   :  { %v1269_v9 = vadd.f32 %v1266_v1, %v2656_v21 }
 0x637   :  { %2293 = vmatpush1.bf16.msra.mxu0 %v2543_v15  ;;  %2323 = vmatpush3.bf16.msra.mxu1 %v2557_v32  ;;  %v1267_v32 = vld [vmem:[#allocation3 + $0x98] sm:$0xff] }
 0x638   :  { %2295 = vmatprep.subr.bf16.mxu0 %v2546_v16  ;;  %2324 = vmatprep.subr.bf16.mxu1 %v2476_v0 }
 0x63b   :  { %2297 = vmatpush1.bf16.msra.mxu0 %v2549_v23  ;;  %2326 = vmatpush3.bf16.msra.mxu1 %v2567_v41 }
 0x63c   :  { %2299 = vmatprep.subr.bf16.mxu0 %v2554_v26  ;;  %2327 = vmatprep.subr.bf16.mxu1 %v2476_v0 }
 0x63f   :  { %2301 = vmatpush1.bf16.msra.mxu0 %v2561_v35  ;;  %2329 = vmatpush3.bf16.msra.mxu1 %v2577_v50  ;;  %v1270_v35 = vadd.f32 %v1267_v32, %v2659_v31 }
 0x640   :  { %2303 = vmatprep.subr.bf16.mxu0 %v2564_v36  ;;  %2330 = vmatprep.subr.bf16.mxu1 %v2476_v0 }
 0x643   :  { %2305 = vmatpush1.bf16.msra.mxu0 %v2571_v44  ;;  %2332 = vmatpush3.bf16.msra.mxu1 %v2587_v59  ;;  %v1268_v44 = vld [vmem:[#allocation3 + $0xa0] sm:$0xff] }
 0x644   :  { %2307 = vmatprep.subr.bf16.mxu0 %v2574_v45  ;;  %2333 = vmatprep.subr.bf16.mxu1 %v2476_v0  ;;  %v1271_v50 = vadd.f32 %v1268_v44, %v2667_v47 }
 0x647   :  { %2309 = vmatpush1.bf16.msra.mxu0 %v2581_v53  ;;  %2335 = vmatpush3.bf16.msra.mxu1 %v2597_v4 }
 0x648   :  { %2311 = vmatprep.subr.bf16.mxu0 %v2584_v54  ;;  %2336 = vmatprep.subr.bf16.mxu1 %v2476_v0 }
 0x64b   :  { %2313 = vmatpush1.bf16.msra.mxu0 %v2591_v62  ;;  %2338 = vmatpush3.bf16.msra.mxu1 %v2605_v11 }
 0x64c   :  { %2315 = vmatprep.subr.bf16.mxu0 %v2594_v63  ;;  %2339 = vmatprep.subr.bf16.mxu1 %v2476_v0 }
 0x64f   :  { %2317 = vmatpush1.bf16.msra.mxu0 %v2601_v8  ;;  %2341 = vmatpush3.bf16.msra.mxu1 %v2611_v14 }
 0x705   :  { %v1190_v10 = vpop.f32.mrb[12].mxu0  ;;  %v1261_v15 = vpop.f32.mrb[12].mxu1 }
 0x706   :  { %v1272_v16 = vadd.f32 %v1269_v9, %v1190_v10  ;;  %v1192_v23 = vpop.f32.mrb[13].mxu0  ;;  %v1858_v24 = vpop.f32.mrb[13].mxu1  ;;  %v1282_v54 = vadd.f32 %v2665_v43, %v1261_v15 }
 0x707   :  { %v1273_v36 = vadd.f32 %v1270_v35, %v1192_v23 }
 0x708   :  { %v1274_v26 = vmul.f32 0.5, %v1272_v16 }
 0x709   :  { %v1278_v41 = vmul.f32 0.5, %v1273_v36 }
 0x70a   :  { %2388 = vtanh.f32 %v1274_v26 }
 0x70b   :  { %2390 = vtanh.f32 %v1278_v41 }
 0x714   :  { %v2389_v0 = vpop.eup %2388 }
 0x715   :  { %v1276_v45 = vmul.f32 0.5, %v2389_v0  ;;  %v2391_v63 = vpop.eup %2390 }
 0x716   :  { %v1280_v4 = vmul.f32 0.5, %v2391_v63 }
 0x717   :  { %v1277_v53 = vadd.f32 0.5, %v1276_v45 }
 0x718   :  { %v1281_v11 = vadd.f32 0.5, %v1280_v4 }
 0x719   :  { %v1283_v59 = vmul.f32 %v1282_v54, %v1277_v53 }
 0x71b   :  { %v1284_v62 = vadd.f32 %v1283_v59, %v1271_v50 }
 0x71d   :  { %2392 = vtanh.f32 %v1284_v62 }
 0x727   :  { %v2393_v8 = vpop.eup %2392 }
 0x728   :  { %v1286_v14 = vsub.f32 %v2896_v6, %v2393_v8 }
 0x72a   :  { %v1287_v7 = vmul.f32 %v1286_v14, %v1281_v11 }
 0x72c   :  { %v1288_v12 = vadd.f32 %v2393_v8, %v1287_v7 }
 0x72e   :  { %1290 = vst [vmem:[#allocation8 + $0x30] sm:$0xff] %v1288_v12  ;;  %1356 = vmatmul.mubr.f32.vlgmr.msra.gmra.mrb[14].mxu0 %v1288_v12  ;;  %1892 = vmatmul.mubr.f32.vlgmr.msra.gmra.mrb[14].mxu1 %v1288_v12 }
 0x801   :  { %v1357_v18 = vpop.f32.mrb[14].mxu0  ;;  %v1428_v19 = vpop.f32.mrb[14].mxu1 }
 0x802   :  { %v1439_v20 = vadd.f32 %v1436_v17, %v1357_v18  ;;  %v1359_v22 = vpop.f32.mrb[15].mxu0  ;;  %v1893_v25 = vpop.f32.mrb[15].mxu1  ;;  %v1449_v21 = vadd.f32 %v2665_v43, %v1428_v19 }
 0x803   :  { %v1440_v30 = vadd.f32 %v1437_v29, %v1359_v22 }
 0x804   :  { %v1441_v27 = vmul.f32 0.5, %v1439_v20 }
 0x805   :  { %v1445_v33 = vmul.f32 0.5, %v1440_v30 }
 0x806   :  { %2394 = vtanh.f32 %v1441_v27 }
 0x807   :  { %2396 = vtanh.f32 %v1445_v33 }
 0x810   :  { %v2395_v34 = vpop.eup %2394 }
 0x811   :  { %v1443_v38 = vmul.f32 0.5, %v2395_v34  ;;  %v2397_v48 = vpop.eup %2396 }
 0x812   :  { %v1447_v5 = vmul.f32 0.5, %v2397_v48 }
 0x813   :  { %v1444_v40 = vadd.f32 0.5, %v1443_v38 }
 0x814   :  { %v1448_v51 = vadd.f32 0.5, %v1447_v5 }
 0x815   :  { %v1450_v42 = vmul.f32 %v1449_v21, %v1444_v40 }
 0x817   :  { %v1451_v46 = vadd.f32 %v1450_v42, %v1438_v39 }
 0x819   :  { %2398 = vtanh.f32 %v1451_v46 }
 0x823   :  { %v2399_v49 = vpop.eup %2398 }
 0x824   :  { %v1453_v52 = vsub.f32 %v1288_v12, %v2399_v49 }
 0x826   :  { %v1454_v31 = vmul.f32 %v1453_v52, %v1448_v51 }
 0x828   :  { %v1455_v55 = vadd.f32 %v2399_v49, %v1454_v31 }
 0x82a   :  { %1457 = vst [vmem:[#allocation8 + $0x38] sm:$0xff] %v1455_v55 }
 0x82b   :  { %2455 = shalt.err (!%p2452_p6)
}
 0x82c   :  { %s2456_s20 = scalar_lea.hbm %s2959_s4, 1024 }
 0x82d   :  { %p2457_p7 = scmp.ne.s32.totalorder %s2959_s4, %s2456_s20  ;;  %p2460_p8 = scmp.lt.u32.totalorder %s2456_s20, %s2959_s4 }
 0x82f   :  { %p2462_p9 = pnand %p2460_p8, %p2457_p7 }
 0x831   :  { %2465 = shalt.err (!%p2462_p9)
}
 0x832   :  { %s2480_s25 = smov 128   ;;  %s2481_s26 = smov 8  }
 0x833   :  { %1470 = dma.vmem_to_hbm [thread:$0]  %s1465_s16, 1024, %s2959_s4, [#allocation5], %s2480_s25, %s2480_s25, %s2481_s26  }
 0x834   :  { %2470 = dma.done.wait [#allocation5], 1024  }
 0x835   :  { %2471 = vsyncadd [#allocation5], 4294966272 }
 0x836   :  { %1474 = vsyncpa [#allocation4], 1 }
 0x837   :  { %1475 = vsyncpa [#allocation7], 1 }
 0x838   :  { %1476 = vsyncpa [#allocation5], 1 }

</bundles_post_ra>
